<compile_context>
chip_gen: v7x
topology: tpu7x:2x2x1
jax: 0.10.0
libtpu: 0.0.40
codegen_flags: <defaults>
</compile_context>

<pallas_src>
import numpy as np
import jax
import jax.numpy as jnp
from jax.experimental import pallas as pl
from jax.experimental.pallas import tpu as pltpu


# ----------------------------- helpers (host) ------------------------------

def l2m(sr: float, l: float) -> float:
    return 12 * np.log2(sr / (440 * l)) + 69


def m2l(sr: float, m):
    return sr / (440 * 2.0 ** ((np.asarray(m, dtype=np.float64) - 69) / 12))


def midi_range(sr: int, lmin: int, lmax: int):
    return int(np.ceil(l2m(sr, lmax))), int(l2m(sr, lmin))


def _round_up(x: int, m: int) -> int:
    return (x + m - 1) // m * m


# ------------------------------ Pallas kernel ------------------------------

def _make_yingram_kernel(tf: int, wc: int, tau: int, taup: int, mxu_dtype):
    """Kernel closed over static sizes.

    Refs:
      frames_ref : [tf, wp]    frame block, zero beyond lane W (wp >= wc + tau)
      c_ref      : [wc, taup]  fused cumsum matrix (cols >= tau and rows >= W zero)
      lt_ref     : [taup, taup] LT[k, j] = 1 if 1 <= k <= j else 0
      g_ref      : [taup, nbp] fused gather+interp matrix, lag-index scaling folded in
      g0_ref     : [1, nbp]    constant bias row (cumdiff[0] == 1 contribution)
      out_ref    : [tf, nbp]
      corr_ref   : [tf, taup]  VMEM scratch for the autocorrelation columns
    """

    def kernel(frames_ref, c_ref, lt_ref, g_ref, g0_ref, out_ref, corr_ref):
        # Window: first `wc` lanes of the zero-padded frame block.
        a = frames_ref[:, pl.ds(0, wc)]                       # [tf, wc] f32
        sq = (a * a).astype(mxu_dtype)

        # Energy terms cs[W-j] + cs[W] - cs[j] fused into ONE constant matmul.
        energy = jnp.dot(sq, c_ref[...],
                         preferred_element_type=jnp.float32)  # [tf, taup]

        # Zero-padded time-domain autocorrelation (== FFT autocorr of the
        # reference): corr[f, t] = sum_s x[f, s] * x[f, s + t].
        # One lag per step; each column goes straight into the VMEM scratch
        # (bounded vreg liveness, no live column list, no concatenate).
        corr_ref[...] = jnp.zeros_like(corr_ref)
        for t in range(tau):
            b = a if t == 0 else frames_ref[:, pl.ds(t, wc)]  # x[s + t]
            corr_ref[:, pl.ds(t, 1)] = jnp.sum(a * b, axis=-1, keepdims=True)

        # YIN difference function (f32 throughout the sensitive subtraction).
        diff = energy - 2.0 * corr_ref[...]                   # [tf, taup]

        # Cumulative mean-normalized difference: prefix sum over lags via a
        # constant lower-triangular matmul.  The lag-index scaling and the
        # lag-0 "1.0" handling are folded into G'/g0, so no iota/where here.
        running = jnp.dot(diff.astype(mxu_dtype), lt_ref[...],
                          preferred_element_type=jnp.float32) # [tf, taup]
        cm = diff / (running + 1e-07)

        # Fused fractional-lag gather + interpolation (lane-dense output).
        out_ref[...] = (jnp.dot(cm.astype(mxu_dtype), g_ref[...],
                                preferred_element_type=jnp.float32)
                        + g0_ref[...]).astype(out_ref.dtype)

    return kernel


# ------------------------------ wrapper (glue) ------------------------------

def yingram_pallas(audio, *, strides, windows, lmin, lmax, bins, sr=16000,
                   frame_tile=128, mxu_dtype=jnp.float32):
    """audio: [B, T] float32 -> [B, T//strides + 1, bins*(mmax-mmin+1)].

    frame_tile: max frames per grid step (128 fills the MXU; shrunk
                automatically for small batches so the grid has >= 2 steps).
    mxu_dtype : dtype of the constant-matmul operands; jnp.bfloat16 hits the
                fast MXU path on v6e/v7x (verify tolerances: the energy term
                feeds a cancellation-prone subtraction), f32 by default.
    """
    audio = jnp.asarray(audio, dtype=jnp.float32)
    assert windows >= lmax, "windows must be >= lmax for valid autocorrelation"
    B, T = audio.shape
    W, TAU = windows, lmax
    mmin, mmax = midi_range(sr, lmin, lmax)

    # --- framing (glue): W real samples per frame, zero-padded to WP lanes ---
    # TODO(synk): production sizes should frame in-kernel from raw audio to
    # avoid the W/strides HBM duplication of this gathered frame matrix.
    padded = jnp.pad(audio, ((0, 0), (0, W)))
    F = T // strides + 1
    idx = np.arange(F)[:, None] * strides + np.arange(W)[None, :]
    frames = padded[:, idx].reshape(B * F, W)                  # [B*F, W]

    WC = _round_up(W, 128)          # lane-dense correlation window width
    WP = _round_up(WC + TAU, 128)   # frame block width (slices t..t+WC fit)
    TAUP = _round_up(TAU, 128)      # lane-dense lag axis

    n_rows = B * F
    # >= 2 grid steps when possible (v7x megacore / pipeline overlap), while
    # keeping TF a multiple of 8 and capped at frame_tile.
    TF = int(min(frame_tile, max(8, _round_up((n_rows + 1) // 2, 8))))
    n_total = _round_up(n_rows, TF)
    frames = jnp.pad(frames, ((0, n_total - n_rows), (0, WP - W)))

    # --- constant matrices (host, deterministic, float64) ---
    lags = m2l(sr, np.arange(mmin, mmax + 1, 1.0 / bins))
    NB = lags.shape[0]
    NBP = _round_up(NB, 128)
    lf = np.floor(lags).astype(np.int64)
    lc = np.ceil(lags).astype(np.int64)
    denom = (lc - lf).astype(np.float64)
    alpha = np.where(denom > 0,
                     (lags - lf) / np.where(denom > 0, denom, 1.0),
                     0.0)                                      # NaN-safe

    # Fused cumsum matrix: coefficient of sq[t] in cs[W-j] + cs[W] - cs[j].
    t_idx = np.arange(WC)[:, None]
    j_idx = np.arange(TAUP)[None, :]
    C = ((t_idx < (W - j_idx)).astype(np.float64)
         - (t_idx < j_idx).astype(np.float64) + 1.0)
    C[W:, :] = 0.0                                             # padded rows
    C[:, TAU:] = 0.0                                           # padded lags

    # Lower-triangular prefix-sum matrix (column 0 zero).
    k_idx = np.arange(TAUP)[:, None]
    LT = ((k_idx >= 1) & (k_idx <= j_idx)).astype(np.float64)  # [TAUP, TAUP]

    # Fused gather + interpolation, with the lag-index scaling folded in and
    # the lag-0 constant contribution split off as a bias row.
    jj = np.arange(TAUP)
    Gf = (jj[:, None] == lf[None, :]).astype(np.float64)
    Gc = (jj[:, None] == lc[None, :]).astype(np.float64)
    G = Gf * (1.0 - alpha)[None, :] + Gc * alpha[None, :]      # [TAUP, NB]
    Gp = np.zeros((TAUP, NBP), dtype=np.float64)
    Gp[:, :NB] = G * jj[:, None]                               # j * G[j, :]
    g0p = np.zeros((1, NBP), dtype=np.float64)
    g0p[0, :NB] = G[0, :]                                      # cumdiff[0]==1

    kernel = _make_yingram_kernel(TF, WC, TAU, TAUP, mxu_dtype)

    # Conservative VMEM budget (double-buffered blocks + scratch), generous
    # headroom, capped so it stays valid on v7x's smaller VMEM.
    vmem_bytes = 4 * (2 * TF * WP + 2 * WC * TAUP + 2 * TAUP * TAUP
                      + 2 * TAUP * NBP + 2 * 8 * NBP + 2 * TF * NBP
                      + TF * TAUP)
    vmem_limit = int(min(64 * 1024 * 1024, max(16 * 1024 * 1024, 2 * vmem_bytes)))

    const_spec = lambda shape: pl.BlockSpec(shape, lambda i: (0, 0))
    out = pl.pallas_call(
        kernel,
        out_shape=jax.ShapeDtypeStruct((n_total, NBP), jnp.float32),
        grid=(n_total // TF,),
        in_specs=[
            pl.BlockSpec((TF, WP), lambda i: (i, 0)),          # frames
            const_spec((WC, TAUP)),                            # C
            const_spec((TAUP, TAUP)),                          # LT
            const_spec((TAUP, NBP)),                           # G'
            const_spec((1, NBP)),                              # g0
        ],
        out_specs=pl.BlockSpec((TF, NBP), lambda i: (i, 0)),
        scratch_shapes=[pltpu.VMEM((TF, TAUP), jnp.float32)],
        compiler_params=pltpu.CompilerParams(
            dimension_semantics=("parallel",),
            vmem_limit_bytes=vmem_limit),
    )(frames,
      jnp.asarray(C, dtype=mxu_dtype),
      jnp.asarray(LT, dtype=mxu_dtype),
      jnp.asarray(Gp, dtype=mxu_dtype),
      jnp.asarray(g0p, dtype=jnp.float32))

    return out[:n_rows, :NB].reshape(B, F, NB)


# ------------------------------ numpy reference -----------------------------

def yingram_ref(audio, *, strides, windows, lmin, lmax, bins, sr=16000):
    audio = np.asarray(audio, dtype=np.float64)
    B, T = audio.shape
    W, TAU = windows, lmax
    mmin, mmax = midi_range(sr, lmin, lmax)
    padded = np.pad(audio, ((0, 0), (0, W)))
    F = T // strides + 1
    idx = np.arange(F)[:, None] * strides + np.arange(W)[None, :]
    frames = padded[:, idx]                                    # [B, F, W]
    fft = np.fft.rfft(frames, 2 * W, axis=-1)
    corr = np.fft.irfft(np.abs(fft) ** 2, axis=-1)
    cumsum = np.concatenate(
        [np.zeros((B, F, 1)), np.cumsum(frames ** 2, axis=-1)], axis=-1)
    diff = (cumsum[..., W - TAU + 1:W + 1][..., ::-1]
            - 2 * corr[..., :TAU]
            + cumsum[..., W:W + 1]
            - cumsum[..., :TAU])
    d1 = diff[..., 1:]
    cmnd = d1 / (np.cumsum(d1, axis=-1) + 1e-07) * np.arange(1, TAU)
    cumdiff = np.concatenate([np.ones((B, F, 1)), cmnd], axis=-1)
    lags = m2l(sr, np.arange(mmin, mmax + 1, 1.0 / bins))
    lc = np.ceil(lags).astype(np.int64)
    lf = np.floor(lags).astype(np.int64)
    denom = (lc - lf).astype(np.float64)
    alpha = np.where(denom > 0,
                     (lags - lf) / np.where(denom > 0, denom, 1.0),
                     0.0)
    return ((cumdiff[..., lc] - cumdiff[..., lf]) * alpha
            + cumdiff[..., lf]).astype(np.float32)


# ---------------------------------- main ------------------------------------

if __name__ == "__main__":
    # small config: strides=16, windows=64, lag range [16, 40], 2 bins/semitone
    cfg = dict(strides=16, windows=64, lmin=16, lmax=40, bins=2, sr=16000)
    B, T = 2, 128

    key = jax.random.PRNGKey(0)
    audio = jax.random.uniform(key, (B, T), dtype=jnp.float32,
                               minval=-1.0, maxval=1.0)

    out = yingram_pallas(audio, **cfg)
    out = jax.block_until_ready(out)

    ref = yingram_ref(np.asarray(audio), **cfg)
    assert out.shape == ref.shape, (out.shape, ref.shape)
    np.testing.assert_allclose(np.asarray(out), ref, rtol=1e-2, atol=1e-2)

    print("KERNEL_OK")
</pallas_src>

<mosaic_0001>
module attributes {stable_mosaic.version = 11 : i64} {
  func.func @kernel(%arg0: i32, %arg1: memref<16x256xf32, #tpu.memory_space<vmem>>, %arg2: memref<128x128xf32, #tpu.memory_space<vmem>>, %arg3: memref<128x128xf32, #tpu.memory_space<vmem>>, %arg4: memref<128x128xf32, #tpu.memory_space<vmem>>, %arg5: memref<1x128xf32, #tpu.memory_space<vmem>>, %arg6: memref<16x128xf32, #tpu.memory_space<vmem>>, %arg7: memref<16x128xf32, #tpu.memory_space<vmem>>) attributes {dimension_semantics = [#tpu.dimension_semantics<parallel>], iteration_bounds = array<i64: 2>, scalar_prefetch = 0 : i64, scratch_operands = 1 : i64, tpu.core_type = #tpu.core_type<tc>, window_params = [{transform_indices = @transform_0, window_bounds = array<i64: 16, 256>}, {pipeline_mode = #tpu.pipeline_mode<synchronous>, transform_indices = @transform_1, window_bounds = array<i64: 128, 128>}, {pipeline_mode = #tpu.pipeline_mode<synchronous>, transform_indices = @transform_2, window_bounds = array<i64: 128, 128>}, {pipeline_mode = #tpu.pipeline_mode<synchronous>, transform_indices = @transform_3, window_bounds = array<i64: 128, 128>}, {pipeline_mode = #tpu.pipeline_mode<synchronous>, transform_indices = @transform_4, window_bounds = array<i64: 1, 128>}, {transform_indices = @transform_5, window_bounds = array<i64: 16, 128>}]} {
    %c0 = arith.constant 0 : index
    %c0_0 = arith.constant 0 : index
    %0 = vector.load %arg1[%c0, %c0_0] : memref<16x256xf32, #tpu.memory_space<vmem>>, vector<16x128xf32>
    %1 = arith.mulf %0, %0 : vector<16x128xf32>
    %c0_1 = arith.constant 0 : index
    %c0_2 = arith.constant 0 : index
    %2 = vector.load %arg2[%c0_1, %c0_2] : memref<128x128xf32, #tpu.memory_space<vmem>>, vector<128x128xf32>
    %cst = arith.constant dense<0.000000e+00> : vector<16x128xf32>
    %3 = tpu.matmul %1, %2, %cst {dimension_numbers = #tpu.dot_dimension_numbers<[1], [0], [0], [1], [0, 0, 1, 1], [], []>} : vector<16x128xf32>, vector<128x128xf32>, vector<16x128xf32> -> vector<16x128xf32>
    %cst_3 = arith.constant 0.000000e+00 : f32
    %4 = vector.broadcast %cst_3 : f32 to vector<16x128xf32>
    %c0_4 = arith.constant 0 : index
    %c0_5 = arith.constant 0 : index
    %5 = vector.load %arg7[%c0_4, %c0_5] : memref<16x128xf32, #tpu.memory_space<vmem>>, vector<16x128xf32>
    tpu.vector_store %arg7[%c0_4, %c0_5], %4 {strides = array<i32>} : memref<16x128xf32, #tpu.memory_space<vmem>>, vector<16x128xf32>,
    %6 = arith.mulf %0, %0 : vector<16x128xf32>
    %cst_6 = arith.constant dense<0.000000e+00> : vector<16xf32>
    %7 = vector.multi_reduction <add>, %6, %cst_6 [1] : vector<16x128xf32> to vector<16xf32>
    %8 = vector.shape_cast %7 : vector<16xf32> to vector<16x1xf32>
    %c0_7 = arith.constant 0 : index
    %c0_8 = arith.constant 0 : index
    %9 = vector.load %arg7[%c0_7, %c0_8] : memref<16x128xf32, #tpu.memory_space<vmem>>, vector<16x1xf32>
    tpu.vector_store %arg7[%c0_7, %c0_8], %8 {strides = array<i32>} : memref<16x128xf32, #tpu.memory_space<vmem>>, vector<16x1xf32>,
    %c0_9 = arith.constant 0 : index
    %c1 = arith.constant 1 : index
    %10 = vector.load %arg1[%c0_9, %c1] : memref<16x256xf32, #tpu.memory_space<vmem>>, vector<16x128xf32>
    %11 = arith.mulf %0, %10 : vector<16x128xf32>
    %cst_10 = arith.constant dense<0.000000e+00> : vector<16xf32>
    %12 = vector.multi_reduction <add>, %11, %cst_10 [1] : vector<16x128xf32> to vector<16xf32>
    %13 = vector.shape_cast %12 : vector<16xf32> to vector<16x1xf32>
    %c0_11 = arith.constant 0 : index
    %c1_12 = arith.constant 1 : index
    %14 = vector.load %arg7[%c0_11, %c1_12] : memref<16x128xf32, #tpu.memory_space<vmem>>, vector<16x1xf32>
    tpu.vector_store %arg7[%c0_11, %c1_12], %13 {strides = array<i32>} : memref<16x128xf32, #tpu.memory_space<vmem>>, vector<16x1xf32>,
    %c0_13 = arith.constant 0 : index
    %c2 = arith.constant 2 : index
    %15 = vector.load %arg1[%c0_13, %c2] : memref<16x256xf32, #tpu.memory_space<vmem>>, vector<16x128xf32>
    %16 = arith.mulf %0, %15 : vector<16x128xf32>
    %cst_14 = arith.constant dense<0.000000e+00> : vector<16xf32>
    %17 = vector.multi_reduction <add>, %16, %cst_14 [1] : vector<16x128xf32> to vector<16xf32>
    %18 = vector.shape_cast %17 : vector<16xf32> to vector<16x1xf32>
    %c0_15 = arith.constant 0 : index
    %c2_16 = arith.constant 2 : index
    %19 = vector.load %arg7[%c0_15, %c2_16] : memref<16x128xf32, #tpu.memory_space<vmem>>, vector<16x1xf32>
    tpu.vector_store %arg7[%c0_15, %c2_16], %18 {strides = array<i32>} : memref<16x128xf32, #tpu.memory_space<vmem>>, vector<16x1xf32>,
    %c0_17 = arith.constant 0 : index
    %c3 = arith.constant 3 : index
    %20 = vector.load %arg1[%c0_17, %c3] : memref<16x256xf32, #tpu.memory_space<vmem>>, vector<16x128xf32>
    %21 = arith.mulf %0, %20 : vector<16x128xf32>
    %cst_18 = arith.constant dense<0.000000e+00> : vector<16xf32>
    %22 = vector.multi_reduction <add>, %21, %cst_18 [1] : vector<16x128xf32> to vector<16xf32>
    %23 = vector.shape_cast %22 : vector<16xf32> to vector<16x1xf32>
    %c0_19 = arith.constant 0 : index
    %c3_20 = arith.constant 3 : index
    %24 = vector.load %arg7[%c0_19, %c3_20] : memref<16x128xf32, #tpu.memory_space<vmem>>, vector<16x1xf32>
    tpu.vector_store %arg7[%c0_19, %c3_20], %23 {strides = array<i32>} : memref<16x128xf32, #tpu.memory_space<vmem>>, vector<16x1xf32>,
    %c0_21 = arith.constant 0 : index
    %c4 = arith.constant 4 : index
    %25 = vector.load %arg1[%c0_21, %c4] : memref<16x256xf32, #tpu.memory_space<vmem>>, vector<16x128xf32>
    %26 = arith.mulf %0, %25 : vector<16x128xf32>
    %cst_22 = arith.constant dense<0.000000e+00> : vector<16xf32>
    %27 = vector.multi_reduction <add>, %26, %cst_22 [1] : vector<16x128xf32> to vector<16xf32>
    %28 = vector.shape_cast %27 : vector<16xf32> to vector<16x1xf32>
    %c0_23 = arith.constant 0 : index
    %c4_24 = arith.constant 4 : index
    %29 = vector.load %arg7[%c0_23, %c4_24] : memref<16x128xf32, #tpu.memory_space<vmem>>, vector<16x1xf32>
    tpu.vector_store %arg7[%c0_23, %c4_24], %28 {strides = array<i32>} : memref<16x128xf32, #tpu.memory_space<vmem>>, vector<16x1xf32>,
    %c0_25 = arith.constant 0 : index
    %c5 = arith.constant 5 : index
    %30 = vector.load %arg1[%c0_25, %c5] : memref<16x256xf32, #tpu.memory_space<vmem>>, vector<16x128xf32>
    %31 = arith.mulf %0, %30 : vector<16x128xf32>
    %cst_26 = arith.constant dense<0.000000e+00> : vector<16xf32>
    %32 = vector.multi_reduction <add>, %31, %cst_26 [1] : vector<16x128xf32> to vector<16xf32>
    %33 = vector.shape_cast %32 : vector<16xf32> to vector<16x1xf32>
    %c0_27 = arith.constant 0 : index
    %c5_28 = arith.constant 5 : index
    %34 = vector.load %arg7[%c0_27, %c5_28] : memref<16x128xf32, #tpu.memory_space<vmem>>, vector<16x1xf32>
    tpu.vector_store %arg7[%c0_27, %c5_28], %33 {strides = array<i32>} : memref<16x128xf32, #tpu.memory_space<vmem>>, vector<16x1xf32>,
    %c0_29 = arith.constant 0 : index
    %c6 = arith.constant 6 : index
    %35 = vector.load %arg1[%c0_29, %c6] : memref<16x256xf32, #tpu.memory_space<vmem>>, vector<16x128xf32>
    %36 = arith.mulf %0, %35 : vector<16x128xf32>
    %cst_30 = arith.constant dense<0.000000e+00> : vector<16xf32>
    %37 = vector.multi_reduction <add>, %36, %cst_30 [1] : vector<16x128xf32> to vector<16xf32>
    %38 = vector.shape_cast %37 : vector<16xf32> to vector<16x1xf32>
    %c0_31 = arith.constant 0 : index
    %c6_32 = arith.constant 6 : index
    %39 = vector.load %arg7[%c0_31, %c6_32] : memref<16x128xf32, #tpu.memory_space<vmem>>, vector<16x1xf32>
    tpu.vector_store %arg7[%c0_31, %c6_32], %38 {strides = array<i32>} : memref<16x128xf32, #tpu.memory_space<vmem>>, vector<16x1xf32>,
    %c0_33 = arith.constant 0 : index
    %c7 = arith.constant 7 : index
    %40 = vector.load %arg1[%c0_33, %c7] : memref<16x256xf32, #tpu.memory_space<vmem>>, vector<16x128xf32>
    %41 = arith.mulf %0, %40 : vector<16x128xf32>
    %cst_34 = arith.constant dense<0.000000e+00> : vector<16xf32>
    %42 = vector.multi_reduction <add>, %41, %cst_34 [1] : vector<16x128xf32> to vector<16xf32>
    %43 = vector.shape_cast %42 : vector<16xf32> to vector<16x1xf32>
    %c0_35 = arith.constant 0 : index
    %c7_36 = arith.constant 7 : index
    %44 = vector.load %arg7[%c0_35, %c7_36] : memref<16x128xf32, #tpu.memory_space<vmem>>, vector<16x1xf32>
    tpu.vector_store %arg7[%c0_35, %c7_36], %43 {strides = array<i32>} : memref<16x128xf32, #tpu.memory_space<vmem>>, vector<16x1xf32>,
    %c0_37 = arith.constant 0 : index
    %c8 = arith.constant 8 : index
    %45 = vector.load %arg1[%c0_37, %c8] : memref<16x256xf32, #tpu.memory_space<vmem>>, vector<16x128xf32>
    %46 = arith.mulf %0, %45 : vector<16x128xf32>
    %cst_38 = arith.constant dense<0.000000e+00> : vector<16xf32>
    %47 = vector.multi_reduction <add>, %46, %cst_38 [1] : vector<16x128xf32> to vector<16xf32>
    %48 = vector.shape_cast %47 : vector<16xf32> to vector<16x1xf32>
    %c0_39 = arith.constant 0 : index
    %c8_40 = arith.constant 8 : index
    %49 = vector.load %arg7[%c0_39, %c8_40] : memref<16x128xf32, #tpu.memory_space<vmem>>, vector<16x1xf32>
    tpu.vector_store %arg7[%c0_39, %c8_40], %48 {strides = array<i32>} : memref<16x128xf32, #tpu.memory_space<vmem>>, vector<16x1xf32>,
    %c0_41 = arith.constant 0 : index
    %c9 = arith.constant 9 : index
    %50 = vector.load %arg1[%c0_41, %c9] : memref<16x256xf32, #tpu.memory_space<vmem>>, vector<16x128xf32>
    %51 = arith.mulf %0, %50 : vector<16x128xf32>
    %cst_42 = arith.constant dense<0.000000e+00> : vector<16xf32>
    %52 = vector.multi_reduction <add>, %51, %cst_42 [1] : vector<16x128xf32> to vector<16xf32>
    %53 = vector.shape_cast %52 : vector<16xf32> to vector<16x1xf32>
    %c0_43 = arith.constant 0 : index
    %c9_44 = arith.constant 9 : index
    %54 = vector.load %arg7[%c0_43, %c9_44] : memref<16x128xf32, #tpu.memory_space<vmem>>, vector<16x1xf32>
    tpu.vector_store %arg7[%c0_43, %c9_44], %53 {strides = array<i32>} : memref<16x128xf32, #tpu.memory_space<vmem>>, vector<16x1xf32>,
    %c0_45 = arith.constant 0 : index
    %c10 = arith.constant 10 : index
    %55 = vector.load %arg1[%c0_45, %c10] : memref<16x256xf32, #tpu.memory_space<vmem>>, vector<16x128xf32>
    %56 = arith.mulf %0, %55 : vector<16x128xf32>
    %cst_46 = arith.constant dense<0.000000e+00> : vector<16xf32>
    %57 = vector.multi_reduction <add>, %56, %cst_46 [1] : vector<16x128xf32> to vector<16xf32>
    %58 = vector.shape_cast %57 : vector<16xf32> to vector<16x1xf32>
    %c0_47 = arith.constant 0 : index
    %c10_48 = arith.constant 10 : index
    %59 = vector.load %arg7[%c0_47, %c10_48] : memref<16x128xf32, #tpu.memory_space<vmem>>, vector<16x1xf32>
    tpu.vector_store %arg7[%c0_47, %c10_48], %58 {strides = array<i32>} : memref<16x128xf32, #tpu.memory_space<vmem>>, vector<16x1xf32>,
    %c0_49 = arith.constant 0 : index
    %c11 = arith.constant 11 : index
    %60 = vector.load %arg1[%c0_49, %c11] : memref<16x256xf32, #tpu.memory_space<vmem>>, vector<16x128xf32>
    %61 = arith.mulf %0, %60 : vector<16x128xf32>
    %cst_50 = arith.constant dense<0.000000e+00> : vector<16xf32>
    %62 = vector.multi_reduction <add>, %61, %cst_50 [1] : vector<16x128xf32> to vector<16xf32>
    %63 = vector.shape_cast %62 : vector<16xf32> to vector<16x1xf32>
    %c0_51 = arith.constant 0 : index
    %c11_52 = arith.constant 11 : index
    %64 = vector.load %arg7[%c0_51, %c11_52] : memref<16x128xf32, #tpu.memory_space<vmem>>, vector<16x1xf32>
    tpu.vector_store %arg7[%c0_51, %c11_52], %63 {strides = array<i32>} : memref<16x128xf32, #tpu.memory_space<vmem>>, vector<16x1xf32>,
    %c0_53 = arith.constant 0 : index
    %c12 = arith.constant 12 : index
    %65 = vector.load %arg1[%c0_53, %c12] : memref<16x256xf32, #tpu.memory_space<vmem>>, vector<16x128xf32>
    %66 = arith.mulf %0, %65 : vector<16x128xf32>
    %cst_54 = arith.constant dense<0.000000e+00> : vector<16xf32>
    %67 = vector.multi_reduction <add>, %66, %cst_54 [1] : vector<16x128xf32> to vector<16xf32>
    %68 = vector.shape_cast %67 : vector<16xf32> to vector<16x1xf32>
    %c0_55 = arith.constant 0 : index
    %c12_56 = arith.constant 12 : index
    %69 = vector.load %arg7[%c0_55, %c12_56] : memref<16x128xf32, #tpu.memory_space<vmem>>, vector<16x1xf32>
    tpu.vector_store %arg7[%c0_55, %c12_56], %68 {strides = array<i32>} : memref<16x128xf32, #tpu.memory_space<vmem>>, vector<16x1xf32>,
    %c0_57 = arith.constant 0 : index
    %c13 = arith.constant 13 : index
    %70 = vector.load %arg1[%c0_57, %c13] : memref<16x256xf32, #tpu.memory_space<vmem>>, vector<16x128xf32>
    %71 = arith.mulf %0, %70 : vector<16x128xf32>
    %cst_58 = arith.constant dense<0.000000e+00> : vector<16xf32>
    %72 = vector.multi_reduction <add>, %71, %cst_58 [1] : vector<16x128xf32> to vector<16xf32>
    %73 = vector.shape_cast %72 : vector<16xf32> to vector<16x1xf32>
    %c0_59 = arith.constant 0 : index
    %c13_60 = arith.constant 13 : index
    %74 = vector.load %arg7[%c0_59, %c13_60] : memref<16x128xf32, #tpu.memory_space<vmem>>, vector<16x1xf32>
    tpu.vector_store %arg7[%c0_59, %c13_60], %73 {strides = array<i32>} : memref<16x128xf32, #tpu.memory_space<vmem>>, vector<16x1xf32>,
    %c0_61 = arith.constant 0 : index
    %c14 = arith.constant 14 : index
    %75 = vector.load %arg1[%c0_61, %c14] : memref<16x256xf32, #tpu.memory_space<vmem>>, vector<16x128xf32>
    %76 = arith.mulf %0, %75 : vector<16x128xf32>
    %cst_62 = arith.constant dense<0.000000e+00> : vector<16xf32>
    %77 = vector.multi_reduction <add>, %76, %cst_62 [1] : vector<16x128xf32> to vector<16xf32>
    %78 = vector.shape_cast %77 : vector<16xf32> to vector<16x1xf32>
    %c0_63 = arith.constant 0 : index
    %c14_64 = arith.constant 14 : index
    %79 = vector.load %arg7[%c0_63, %c14_64] : memref<16x128xf32, #tpu.memory_space<vmem>>, vector<16x1xf32>
    tpu.vector_store %arg7[%c0_63, %c14_64], %78 {strides = array<i32>} : memref<16x128xf32, #tpu.memory_space<vmem>>, vector<16x1xf32>,
    %c0_65 = arith.constant 0 : index
    %c15 = arith.constant 15 : index
    %80 = vector.load %arg1[%c0_65, %c15] : memref<16x256xf32, #tpu.memory_space<vmem>>, vector<16x128xf32>
    %81 = arith.mulf %0, %80 : vector<16x128xf32>
    %cst_66 = arith.constant dense<0.000000e+00> : vector<16xf32>
    %82 = vector.multi_reduction <add>, %81, %cst_66 [1] : vector<16x128xf32> to vector<16xf32>
    %83 = vector.shape_cast %82 : vector<16xf32> to vector<16x1xf32>
    %c0_67 = arith.constant 0 : index
    %c15_68 = arith.constant 15 : index
    %84 = vector.load %arg7[%c0_67, %c15_68] : memref<16x128xf32, #tpu.memory_space<vmem>>, vector<16x1xf32>
    tpu.vector_store %arg7[%c0_67, %c15_68], %83 {strides = array<i32>} : memref<16x128xf32, #tpu.memory_space<vmem>>, vector<16x1xf32>,
    %c0_69 = arith.constant 0 : index
    %c16 = arith.constant 16 : index
    %85 = vector.load %arg1[%c0_69, %c16] : memref<16x256xf32, #tpu.memory_space<vmem>>, vector<16x128xf32>
    %86 = arith.mulf %0, %85 : vector<16x128xf32>
    %cst_70 = arith.constant dense<0.000000e+00> : vector<16xf32>
    %87 = vector.multi_reduction <add>, %86, %cst_70 [1] : vector<16x128xf32> to vector<16xf32>
    %88 = vector.shape_cast %87 : vector<16xf32> to vector<16x1xf32>
    %c0_71 = arith.constant 0 : index
    %c16_72 = arith.constant 16 : index
    %89 = vector.load %arg7[%c0_71, %c16_72] : memref<16x128xf32, #tpu.memory_space<vmem>>, vector<16x1xf32>
    tpu.vector_store %arg7[%c0_71, %c16_72], %88 {strides = array<i32>} : memref<16x128xf32, #tpu.memory_space<vmem>>, vector<16x1xf32>,
    %c0_73 = arith.constant 0 : index
    %c17 = arith.constant 17 : index
    %90 = vector.load %arg1[%c0_73, %c17] : memref<16x256xf32, #tpu.memory_space<vmem>>, vector<16x128xf32>
    %91 = arith.mulf %0, %90 : vector<16x128xf32>
    %cst_74 = arith.constant dense<0.000000e+00> : vector<16xf32>
    %92 = vector.multi_reduction <add>, %91, %cst_74 [1] : vector<16x128xf32> to vector<16xf32>
    %93 = vector.shape_cast %92 : vector<16xf32> to vector<16x1xf32>
    %c0_75 = arith.constant 0 : index
    %c17_76 = arith.constant 17 : index
    %94 = vector.load %arg7[%c0_75, %c17_76] : memref<16x128xf32, #tpu.memory_space<vmem>>, vector<16x1xf32>
    tpu.vector_store %arg7[%c0_75, %c17_76], %93 {strides = array<i32>} : memref<16x128xf32, #tpu.memory_space<vmem>>, vector<16x1xf32>,
    %c0_77 = arith.constant 0 : index
    %c18 = arith.constant 18 : index
    %95 = vector.load %arg1[%c0_77, %c18] : memref<16x256xf32, #tpu.memory_space<vmem>>, vector<16x128xf32>
    %96 = arith.mulf %0, %95 : vector<16x128xf32>
    %cst_78 = arith.constant dense<0.000000e+00> : vector<16xf32>
    %97 = vector.multi_reduction <add>, %96, %cst_78 [1] : vector<16x128xf32> to vector<16xf32>
    %98 = vector.shape_cast %97 : vector<16xf32> to vector<16x1xf32>
    %c0_79 = arith.constant 0 : index
    %c18_80 = arith.constant 18 : index
    %99 = vector.load %arg7[%c0_79, %c18_80] : memref<16x128xf32, #tpu.memory_space<vmem>>, vector<16x1xf32>
    tpu.vector_store %arg7[%c0_79, %c18_80], %98 {strides = array<i32>} : memref<16x128xf32, #tpu.memory_space<vmem>>, vector<16x1xf32>,
    %c0_81 = arith.constant 0 : index
    %c19 = arith.constant 19 : index
    %100 = vector.load %arg1[%c0_81, %c19] : memref<16x256xf32, #tpu.memory_space<vmem>>, vector<16x128xf32>
    %101 = arith.mulf %0, %100 : vector<16x128xf32>
    %cst_82 = arith.constant dense<0.000000e+00> : vector<16xf32>
    %102 = vector.multi_reduction <add>, %101, %cst_82 [1] : vector<16x128xf32> to vector<16xf32>
    %103 = vector.shape_cast %102 : vector<16xf32> to vector<16x1xf32>
    %c0_83 = arith.constant 0 : index
    %c19_84 = arith.constant 19 : index
    %104 = vector.load %arg7[%c0_83, %c19_84] : memref<16x128xf32, #tpu.memory_space<vmem>>, vector<16x1xf32>
    tpu.vector_store %arg7[%c0_83, %c19_84], %103 {strides = array<i32>} : memref<16x128xf32, #tpu.memory_space<vmem>>, vector<16x1xf32>,
    %c0_85 = arith.constant 0 : index
    %c20 = arith.constant 20 : index
    %105 = vector.load %arg1[%c0_85, %c20] : memref<16x256xf32, #tpu.memory_space<vmem>>, vector<16x128xf32>
    %106 = arith.mulf %0, %105 : vector<16x128xf32>
    %cst_86 = arith.constant dense<0.000000e+00> : vector<16xf32>
    %107 = vector.multi_reduction <add>, %106, %cst_86 [1] : vector<16x128xf32> to vector<16xf32>
    %108 = vector.shape_cast %107 : vector<16xf32> to vector<16x1xf32>
    %c0_87 = arith.constant 0 : index
    %c20_88 = arith.constant 20 : index
    %109 = vector.load %arg7[%c0_87, %c20_88] : memref<16x128xf32, #tpu.memory_space<vmem>>, vector<16x1xf32>
    tpu.vector_store %arg7[%c0_87, %c20_88], %108 {strides = array<i32>} : memref<16x128xf32, #tpu.memory_space<vmem>>, vector<16x1xf32>,
    %c0_89 = arith.constant 0 : index
    %c21 = arith.constant 21 : index
    %110 = vector.load %arg1[%c0_89, %c21] : memref<16x256xf32, #tpu.memory_space<vmem>>, vector<16x128xf32>
    %111 = arith.mulf %0, %110 : vector<16x128xf32>
    %cst_90 = arith.constant dense<0.000000e+00> : vector<16xf32>
    %112 = vector.multi_reduction <add>, %111, %cst_90 [1] : vector<16x128xf32> to vector<16xf32>
    %113 = vector.shape_cast %112 : vector<16xf32> to vector<16x1xf32>
    %c0_91 = arith.constant 0 : index
    %c21_92 = arith.constant 21 : index
    %114 = vector.load %arg7[%c0_91, %c21_92] : memref<16x128xf32, #tpu.memory_space<vmem>>, vector<16x1xf32>
    tpu.vector_store %arg7[%c0_91, %c21_92], %113 {strides = array<i32>} : memref<16x128xf32, #tpu.memory_space<vmem>>, vector<16x1xf32>,
    %c0_93 = arith.constant 0 : index
    %c22 = arith.constant 22 : index
    %115 = vector.load %arg1[%c0_93, %c22] : memref<16x256xf32, #tpu.memory_space<vmem>>, vector<16x128xf32>
    %116 = arith.mulf %0, %115 : vector<16x128xf32>
    %cst_94 = arith.constant dense<0.000000e+00> : vector<16xf32>
    %117 = vector.multi_reduction <add>, %116, %cst_94 [1] : vector<16x128xf32> to vector<16xf32>
    %118 = vector.shape_cast %117 : vector<16xf32> to vector<16x1xf32>
    %c0_95 = arith.constant 0 : index
    %c22_96 = arith.constant 22 : index
    %119 = vector.load %arg7[%c0_95, %c22_96] : memref<16x128xf32, #tpu.memory_space<vmem>>, vector<16x1xf32>
    tpu.vector_store %arg7[%c0_95, %c22_96], %118 {strides = array<i32>} : memref<16x128xf32, #tpu.memory_space<vmem>>, vector<16x1xf32>,
    %c0_97 = arith.constant 0 : index
    %c23 = arith.constant 23 : index
    %120 = vector.load %arg1[%c0_97, %c23] : memref<16x256xf32, #tpu.memory_space<vmem>>, vector<16x128xf32>
    %121 = arith.mulf %0, %120 : vector<16x128xf32>
    %cst_98 = arith.constant dense<0.000000e+00> : vector<16xf32>
    %122 = vector.multi_reduction <add>, %121, %cst_98 [1] : vector<16x128xf32> to vector<16xf32>
    %123 = vector.shape_cast %122 : vector<16xf32> to vector<16x1xf32>
    %c0_99 = arith.constant 0 : index
    %c23_100 = arith.constant 23 : index
    %124 = vector.load %arg7[%c0_99, %c23_100] : memref<16x128xf32, #tpu.memory_space<vmem>>, vector<16x1xf32>
    tpu.vector_store %arg7[%c0_99, %c23_100], %123 {strides = array<i32>} : memref<16x128xf32, #tpu.memory_space<vmem>>, vector<16x1xf32>,
    %c0_101 = arith.constant 0 : index
    %c24 = arith.constant 24 : index
    %125 = vector.load %arg1[%c0_101, %c24] : memref<16x256xf32, #tpu.memory_space<vmem>>, vector<16x128xf32>
    %126 = arith.mulf %0, %125 : vector<16x128xf32>
    %cst_102 = arith.constant dense<0.000000e+00> : vector<16xf32>
    %127 = vector.multi_reduction <add>, %126, %cst_102 [1] : vector<16x128xf32> to vector<16xf32>
    %128 = vector.shape_cast %127 : vector<16xf32> to vector<16x1xf32>
    %c0_103 = arith.constant 0 : index
    %c24_104 = arith.constant 24 : index
    %129 = vector.load %arg7[%c0_103, %c24_104] : memref<16x128xf32, #tpu.memory_space<vmem>>, vector<16x1xf32>
    tpu.vector_store %arg7[%c0_103, %c24_104], %128 {strides = array<i32>} : memref<16x128xf32, #tpu.memory_space<vmem>>, vector<16x1xf32>,
    %c0_105 = arith.constant 0 : index
    %c25 = arith.constant 25 : index
    %130 = vector.load %arg1[%c0_105, %c25] : memref<16x256xf32, #tpu.memory_space<vmem>>, vector<16x128xf32>
    %131 = arith.mulf %0, %130 : vector<16x128xf32>
    %cst_106 = arith.constant dense<0.000000e+00> : vector<16xf32>
    %132 = vector.multi_reduction <add>, %131, %cst_106 [1] : vector<16x128xf32> to vector<16xf32>
    %133 = vector.shape_cast %132 : vector<16xf32> to vector<16x1xf32>
    %c0_107 = arith.constant 0 : index
    %c25_108 = arith.constant 25 : index
    %134 = vector.load %arg7[%c0_107, %c25_108] : memref<16x128xf32, #tpu.memory_space<vmem>>, vector<16x1xf32>
    tpu.vector_store %arg7[%c0_107, %c25_108], %133 {strides = array<i32>} : memref<16x128xf32, #tpu.memory_space<vmem>>, vector<16x1xf32>,
    %c0_109 = arith.constant 0 : index
    %c26 = arith.constant 26 : index
    %135 = vector.load %arg1[%c0_109, %c26] : memref<16x256xf32, #tpu.memory_space<vmem>>, vector<16x128xf32>
    %136 = arith.mulf %0, %135 : vector<16x128xf32>
    %cst_110 = arith.constant dense<0.000000e+00> : vector<16xf32>
    %137 = vector.multi_reduction <add>, %136, %cst_110 [1] : vector<16x128xf32> to vector<16xf32>
    %138 = vector.shape_cast %137 : vector<16xf32> to vector<16x1xf32>
    %c0_111 = arith.constant 0 : index
    %c26_112 = arith.constant 26 : index
    %139 = vector.load %arg7[%c0_111, %c26_112] : memref<16x128xf32, #tpu.memory_space<vmem>>, vector<16x1xf32>
    tpu.vector_store %arg7[%c0_111, %c26_112], %138 {strides = array<i32>} : memref<16x128xf32, #tpu.memory_space<vmem>>, vector<16x1xf32>,
    %c0_113 = arith.constant 0 : index
    %c27 = arith.constant 27 : index
    %140 = vector.load %arg1[%c0_113, %c27] : memref<16x256xf32, #tpu.memory_space<vmem>>, vector<16x128xf32>
    %141 = arith.mulf %0, %140 : vector<16x128xf32>
    %cst_114 = arith.constant dense<0.000000e+00> : vector<16xf32>
    %142 = vector.multi_reduction <add>, %141, %cst_114 [1] : vector<16x128xf32> to vector<16xf32>
    %143 = vector.shape_cast %142 : vector<16xf32> to vector<16x1xf32>
    %c0_115 = arith.constant 0 : index
    %c27_116 = arith.constant 27 : index
    %144 = vector.load %arg7[%c0_115, %c27_116] : memref<16x128xf32, #tpu.memory_space<vmem>>, vector<16x1xf32>
    tpu.vector_store %arg7[%c0_115, %c27_116], %143 {strides = array<i32>} : memref<16x128xf32, #tpu.memory_space<vmem>>, vector<16x1xf32>,
    %c0_117 = arith.constant 0 : index
    %c28 = arith.constant 28 : index
    %145 = vector.load %arg1[%c0_117, %c28] : memref<16x256xf32, #tpu.memory_space<vmem>>, vector<16x128xf32>
    %146 = arith.mulf %0, %145 : vector<16x128xf32>
    %cst_118 = arith.constant dense<0.000000e+00> : vector<16xf32>
    %147 = vector.multi_reduction <add>, %146, %cst_118 [1] : vector<16x128xf32> to vector<16xf32>
    %148 = vector.shape_cast %147 : vector<16xf32> to vector<16x1xf32>
    %c0_119 = arith.constant 0 : index
    %c28_120 = arith.constant 28 : index
    %149 = vector.load %arg7[%c0_119, %c28_120] : memref<16x128xf32, #tpu.memory_space<vmem>>, vector<16x1xf32>
    tpu.vector_store %arg7[%c0_119, %c28_120], %148 {strides = array<i32>} : memref<16x128xf32, #tpu.memory_space<vmem>>, vector<16x1xf32>,
    %c0_121 = arith.constant 0 : index
    %c29 = arith.constant 29 : index
    %150 = vector.load %arg1[%c0_121, %c29] : memref<16x256xf32, #tpu.memory_space<vmem>>, vector<16x128xf32>
    %151 = arith.mulf %0, %150 : vector<16x128xf32>
    %cst_122 = arith.constant dense<0.000000e+00> : vector<16xf32>
    %152 = vector.multi_reduction <add>, %151, %cst_122 [1] : vector<16x128xf32> to vector<16xf32>
    %153 = vector.shape_cast %152 : vector<16xf32> to vector<16x1xf32>
    %c0_123 = arith.constant 0 : index
    %c29_124 = arith.constant 29 : index
    %154 = vector.load %arg7[%c0_123, %c29_124] : memref<16x128xf32, #tpu.memory_space<vmem>>, vector<16x1xf32>
    tpu.vector_store %arg7[%c0_123, %c29_124], %153 {strides = array<i32>} : memref<16x128xf32, #tpu.memory_space<vmem>>, vector<16x1xf32>,
    %c0_125 = arith.constant 0 : index
    %c30 = arith.constant 30 : index
    %155 = vector.load %arg1[%c0_125, %c30] : memref<16x256xf32, #tpu.memory_space<vmem>>, vector<16x128xf32>
    %156 = arith.mulf %0, %155 : vector<16x128xf32>
    %cst_126 = arith.constant dense<0.000000e+00> : vector<16xf32>
    %157 = vector.multi_reduction <add>, %156, %cst_126 [1] : vector<16x128xf32> to vector<16xf32>
    %158 = vector.shape_cast %157 : vector<16xf32> to vector<16x1xf32>
    %c0_127 = arith.constant 0 : index
    %c30_128 = arith.constant 30 : index
    %159 = vector.load %arg7[%c0_127, %c30_128] : memref<16x128xf32, #tpu.memory_space<vmem>>, vector<16x1xf32>
    tpu.vector_store %arg7[%c0_127, %c30_128], %158 {strides = array<i32>} : memref<16x128xf32, #tpu.memory_space<vmem>>, vector<16x1xf32>,
    %c0_129 = arith.constant 0 : index
    %c31 = arith.constant 31 : index
    %160 = vector.load %arg1[%c0_129, %c31] : memref<16x256xf32, #tpu.memory_space<vmem>>, vector<16x128xf32>
    %161 = arith.mulf %0, %160 : vector<16x128xf32>
    %cst_130 = arith.constant dense<0.000000e+00> : vector<16xf32>
    %162 = vector.multi_reduction <add>, %161, %cst_130 [1] : vector<16x128xf32> to vector<16xf32>
    %163 = vector.shape_cast %162 : vector<16xf32> to vector<16x1xf32>
    %c0_131 = arith.constant 0 : index
    %c31_132 = arith.constant 31 : index
    %164 = vector.load %arg7[%c0_131, %c31_132] : memref<16x128xf32, #tpu.memory_space<vmem>>, vector<16x1xf32>
    tpu.vector_store %arg7[%c0_131, %c31_132], %163 {strides = array<i32>} : memref<16x128xf32, #tpu.memory_space<vmem>>, vector<16x1xf32>,
    %c0_133 = arith.constant 0 : index
    %c32 = arith.constant 32 : index
    %165 = vector.load %arg1[%c0_133, %c32] : memref<16x256xf32, #tpu.memory_space<vmem>>, vector<16x128xf32>
    %166 = arith.mulf %0, %165 : vector<16x128xf32>
    %cst_134 = arith.constant dense<0.000000e+00> : vector<16xf32>
    %167 = vector.multi_reduction <add>, %166, %cst_134 [1] : vector<16x128xf32> to vector<16xf32>
    %168 = vector.shape_cast %167 : vector<16xf32> to vector<16x1xf32>
    %c0_135 = arith.constant 0 : index
    %c32_136 = arith.constant 32 : index
    %169 = vector.load %arg7[%c0_135, %c32_136] : memref<16x128xf32, #tpu.memory_space<vmem>>, vector<16x1xf32>
    tpu.vector_store %arg7[%c0_135, %c32_136], %168 {strides = array<i32>} : memref<16x128xf32, #tpu.memory_space<vmem>>, vector<16x1xf32>,
    %c0_137 = arith.constant 0 : index
    %c33 = arith.constant 33 : index
    %170 = vector.load %arg1[%c0_137, %c33] : memref<16x256xf32, #tpu.memory_space<vmem>>, vector<16x128xf32>
    %171 = arith.mulf %0, %170 : vector<16x128xf32>
    %cst_138 = arith.constant dense<0.000000e+00> : vector<16xf32>
    %172 = vector.multi_reduction <add>, %171, %cst_138 [1] : vector<16x128xf32> to vector<16xf32>
    %173 = vector.shape_cast %172 : vector<16xf32> to vector<16x1xf32>
    %c0_139 = arith.constant 0 : index
    %c33_140 = arith.constant 33 : index
    %174 = vector.load %arg7[%c0_139, %c33_140] : memref<16x128xf32, #tpu.memory_space<vmem>>, vector<16x1xf32>
    tpu.vector_store %arg7[%c0_139, %c33_140], %173 {strides = array<i32>} : memref<16x128xf32, #tpu.memory_space<vmem>>, vector<16x1xf32>,
    %c0_141 = arith.constant 0 : index
    %c34 = arith.constant 34 : index
    %175 = vector.load %arg1[%c0_141, %c34] : memref<16x256xf32, #tpu.memory_space<vmem>>, vector<16x128xf32>
    %176 = arith.mulf %0, %175 : vector<16x128xf32>
    %cst_142 = arith.constant dense<0.000000e+00> : vector<16xf32>
    %177 = vector.multi_reduction <add>, %176, %cst_142 [1] : vector<16x128xf32> to vector<16xf32>
    %178 = vector.shape_cast %177 : vector<16xf32> to vector<16x1xf32>
    %c0_143 = arith.constant 0 : index
    %c34_144 = arith.constant 34 : index
    %179 = vector.load %arg7[%c0_143, %c34_144] : memref<16x128xf32, #tpu.memory_space<vmem>>, vector<16x1xf32>
    tpu.vector_store %arg7[%c0_143, %c34_144], %178 {strides = array<i32>} : memref<16x128xf32, #tpu.memory_space<vmem>>, vector<16x1xf32>,
    %c0_145 = arith.constant 0 : index
    %c35 = arith.constant 35 : index
    %180 = vector.load %arg1[%c0_145, %c35] : memref<16x256xf32, #tpu.memory_space<vmem>>, vector<16x128xf32>
    %181 = arith.mulf %0, %180 : vector<16x128xf32>
    %cst_146 = arith.constant dense<0.000000e+00> : vector<16xf32>
    %182 = vector.multi_reduction <add>, %181, %cst_146 [1] : vector<16x128xf32> to vector<16xf32>
    %183 = vector.shape_cast %182 : vector<16xf32> to vector<16x1xf32>
    %c0_147 = arith.constant 0 : index
    %c35_148 = arith.constant 35 : index
    %184 = vector.load %arg7[%c0_147, %c35_148] : memref<16x128xf32, #tpu.memory_space<vmem>>, vector<16x1xf32>
    tpu.vector_store %arg7[%c0_147, %c35_148], %183 {strides = array<i32>} : memref<16x128xf32, #tpu.memory_space<vmem>>, vector<16x1xf32>,
    %c0_149 = arith.constant 0 : index
    %c36 = arith.constant 36 : index
    %185 = vector.load %arg1[%c0_149, %c36] : memref<16x256xf32, #tpu.memory_space<vmem>>, vector<16x128xf32>
    %186 = arith.mulf %0, %185 : vector<16x128xf32>
    %cst_150 = arith.constant dense<0.000000e+00> : vector<16xf32>
    %187 = vector.multi_reduction <add>, %186, %cst_150 [1] : vector<16x128xf32> to vector<16xf32>
    %188 = vector.shape_cast %187 : vector<16xf32> to vector<16x1xf32>
    %c0_151 = arith.constant 0 : index
    %c36_152 = arith.constant 36 : index
    %189 = vector.load %arg7[%c0_151, %c36_152] : memref<16x128xf32, #tpu.memory_space<vmem>>, vector<16x1xf32>
    tpu.vector_store %arg7[%c0_151, %c36_152], %188 {strides = array<i32>} : memref<16x128xf32, #tpu.memory_space<vmem>>, vector<16x1xf32>,
    %c0_153 = arith.constant 0 : index
    %c37 = arith.constant 37 : index
    %190 = vector.load %arg1[%c0_153, %c37] : memref<16x256xf32, #tpu.memory_space<vmem>>, vector<16x128xf32>
    %191 = arith.mulf %0, %190 : vector<16x128xf32>
    %cst_154 = arith.constant dense<0.000000e+00> : vector<16xf32>
    %192 = vector.multi_reduction <add>, %191, %cst_154 [1] : vector<16x128xf32> to vector<16xf32>
    %193 = vector.shape_cast %192 : vector<16xf32> to vector<16x1xf32>
    %c0_155 = arith.constant 0 : index
    %c37_156 = arith.constant 37 : index
    %194 = vector.load %arg7[%c0_155, %c37_156] : memref<16x128xf32, #tpu.memory_space<vmem>>, vector<16x1xf32>
    tpu.vector_store %arg7[%c0_155, %c37_156], %193 {strides = array<i32>} : memref<16x128xf32, #tpu.memory_space<vmem>>, vector<16x1xf32>,
    %c0_157 = arith.constant 0 : index
    %c38 = arith.constant 38 : index
    %195 = vector.load %arg1[%c0_157, %c38] : memref<16x256xf32, #tpu.memory_space<vmem>>, vector<16x128xf32>
    %196 = arith.mulf %0, %195 : vector<16x128xf32>
    %cst_158 = arith.constant dense<0.000000e+00> : vector<16xf32>
    %197 = vector.multi_reduction <add>, %196, %cst_158 [1] : vector<16x128xf32> to vector<16xf32>
    %198 = vector.shape_cast %197 : vector<16xf32> to vector<16x1xf32>
    %c0_159 = arith.constant 0 : index
    %c38_160 = arith.constant 38 : index
    %199 = vector.load %arg7[%c0_159, %c38_160] : memref<16x128xf32, #tpu.memory_space<vmem>>, vector<16x1xf32>
    tpu.vector_store %arg7[%c0_159, %c38_160], %198 {strides = array<i32>} : memref<16x128xf32, #tpu.memory_space<vmem>>, vector<16x1xf32>,
    %c0_161 = arith.constant 0 : index
    %c39 = arith.constant 39 : index
    %200 = vector.load %arg1[%c0_161, %c39] : memref<16x256xf32, #tpu.memory_space<vmem>>, vector<16x128xf32>
    %201 = arith.mulf %0, %200 : vector<16x128xf32>
    %cst_162 = arith.constant dense<0.000000e+00> : vector<16xf32>
    %202 = vector.multi_reduction <add>, %201, %cst_162 [1] : vector<16x128xf32> to vector<16xf32>
    %203 = vector.shape_cast %202 : vector<16xf32> to vector<16x1xf32>
    %c0_163 = arith.constant 0 : index
    %c39_164 = arith.constant 39 : index
    %204 = vector.load %arg7[%c0_163, %c39_164] : memref<16x128xf32, #tpu.memory_space<vmem>>, vector<16x1xf32>
    tpu.vector_store %arg7[%c0_163, %c39_164], %203 {strides = array<i32>} : memref<16x128xf32, #tpu.memory_space<vmem>>, vector<16x1xf32>,
    %c0_165 = arith.constant 0 : index
    %c0_166 = arith.constant 0 : index
    %205 = vector.load %arg7[%c0_165, %c0_166] : memref<16x128xf32, #tpu.memory_space<vmem>>, vector<16x128xf32>
    %cst_167 = arith.constant 2.000000e+00 : f32
    %206 = vector.broadcast %cst_167 : f32 to vector<16x128xf32>
    %207 = arith.mulf %206, %205 : vector<16x128xf32>
    %208 = arith.subf %3, %207 : vector<16x128xf32>
    %c0_168 = arith.constant 0 : index
    %c0_169 = arith.constant 0 : index
    %209 = vector.load %arg3[%c0_168, %c0_169] : memref<128x128xf32, #tpu.memory_space<vmem>>, vector<128x128xf32>
    %cst_170 = arith.constant dense<0.000000e+00> : vector<16x128xf32>
    %210 = tpu.matmul %208, %209, %cst_170 {dimension_numbers = #tpu.dot_dimension_numbers<[1], [0], [0], [1], [0, 0, 1, 1], [], []>} : vector<16x128xf32>, vector<128x128xf32>, vector<16x128xf32> -> vector<16x128xf32>
    %cst_171 = arith.constant 1.000000e-07 : f32
    %211 = vector.broadcast %cst_171 : f32 to vector<16x128xf32>
    %212 = arith.addf %210, %211 : vector<16x128xf32>
    %213 = arith.divf %208, %212 : vector<16x128xf32>
    %c0_172 = arith.constant 0 : index
    %c0_173 = arith.constant 0 : index
    %214 = vector.load %arg4[%c0_172, %c0_173] : memref<128x128xf32, #tpu.memory_space<vmem>>, vector<128x128xf32>
    %cst_174 = arith.constant dense<0.000000e+00> : vector<16x128xf32>
    %215 = tpu.matmul %213, %214, %cst_174 {dimension_numbers = #tpu.dot_dimension_numbers<[1], [0], [0], [1], [0, 0, 1, 1], [], []>} : vector<16x128xf32>, vector<128x128xf32>, vector<16x128xf32> -> vector<16x128xf32>
    %c0_175 = arith.constant 0 : index
    %c0_176 = arith.constant 0 : index
    %216 = vector.load %arg5[%c0_175, %c0_176] : memref<1x128xf32, #tpu.memory_space<vmem>>, vector<1x128xf32>
    %217 = vector.broadcast %216 : vector<1x128xf32> to vector<16x128xf32>
    %218 = arith.addf %215, %217 : vector<16x128xf32>
    %c0_177 = arith.constant 0 : index
    %c0_178 = arith.constant 0 : index
    %219 = vector.load %arg6[%c0_177, %c0_178] : memref<16x128xf32, #tpu.memory_space<vmem>>, vector<16x128xf32>
    tpu.vector_store %arg6[%c0_177, %c0_178], %218 {strides = array<i32>} : memref<16x128xf32, #tpu.memory_space<vmem>>, vector<16x128xf32>,
    return
  }
  func.func @transform_0(%arg0: i32) -> (i32, i32) {
    %c0_i32 = arith.constant 0 : i32
    %c0_i32_0 = arith.constant 0 : i32
    return %arg0, %c0_i32 : i32, i32
  }
  func.func @transform_1(%arg0: i32) -> (i32, i32) {
    %c0_i32 = arith.constant 0 : i32
    %c0_i32_0 = arith.constant 0 : i32
    %c0_i32_1 = arith.constant 0 : i32
    return %c0_i32, %c0_i32_0 : i32, i32
  }
  func.func @transform_2(%arg0: i32) -> (i32, i32) {
    %c0_i32 = arith.constant 0 : i32
    %c0_i32_0 = arith.constant 0 : i32
    %c0_i32_1 = arith.constant 0 : i32
    return %c0_i32, %c0_i32_0 : i32, i32
  }
  func.func @transform_3(%arg0: i32) -> (i32, i32) {
    %c0_i32 = arith.constant 0 : i32
    %c0_i32_0 = arith.constant 0 : i32
    %c0_i32_1 = arith.constant 0 : i32
    return %c0_i32, %c0_i32_0 : i32, i32
  }
  func.func @transform_4(%arg0: i32) -> (i32, i32) {
    %c0_i32 = arith.constant 0 : i32
    %c0_i32_0 = arith.constant 0 : i32
    %c0_i32_1 = arith.constant 0 : i32
    return %c0_i32, %c0_i32_0 : i32, i32
  }
  func.func @transform_5(%arg0: i32) -> (i32, i32) {
    %c0_i32 = arith.constant 0 : i32
    %c0_i32_0 = arith.constant 0 : i32
    return %arg0, %c0_i32 : i32, i32
  }
}

</mosaic_0001>

<bundles_post_ra>
// kernel: tpu_custom_call.1
= control target key start
LH: loop header
LB: loop body
LE: loop exit
PB: predicated region body
PF: predicated region fallthrough
CT: control target
= control target key end

     0   :  { %10 = vsyncpa [#allocation4], 0  ;;  %s3327_s0 = inlined_call_operand.hbm [shape: f32[32,256], index: 0, kind: input, shape index: {}]   ;;  %s3328_s1 = inlined_call_operand.hbm [shape: f32[128,128], index: 1, kind: input, shape index: {}]   ;;  %s3329_s2 = inlined_call_operand.hbm [shape: f32[128,128], index: 2, kind: input, shape index: {}]   ;;  %s3330_s3 = inlined_call_operand.hbm [shape: f32[128,128], index: 3, kind: input, shape index: {}]   ;;  %s3331_s4 = inlined_call_operand.vmem [shape: f32[1,128], index: 4, kind: input, shape index: {}]   ;;  %s3332_s5 = inlined_call_operand.hbm [shape: f32[32,128], index: 5, kind: output, shape index: {}]  }
   0x1   :  { %12 = vsyncpa [#allocation4 + $0x1], 0 }
   0x2   :  { %13 = vsyncpa [#allocation7], 0 }
   0x3   :  { %14 = vsyncpa [#allocation10], 0 }
   0x4   :  { %15 = vsyncpa [#allocation5], 0 }
   0x5   :  { %17 = vsyncpa [#allocation5 + $0x1], 0  ;;  %s2561_s18 = smov 0   ;;  %s2563_s19 = smov 0  }
   0x6   :  { %s2565_s20 = smov 0   ;;  %s2567_s21 = smov 0  }
   0x7 LB: > { %s2582_s22 = sadd.s32 4294967295, %s2478_s21   ;;  %s1881_s23 = sadd.s32 4294967294, %s2478_s21   ;;  %s2478_s21 = sphi %s2567_s21, %s3355_s21   ;;  %s2474_s20 = sphi %s2565_s20, %s3354_s20   ;;  %s2470_s19 = sphi %s2563_s19, %s3353_s19   ;;  %s2466_s18 = sphi %s2561_s18, %s3352_s18  }
   0x8   : > { %p43_p0 = scmp.ne.s32.totalorder %s2470_s19, %s2466_s18  ;;  %p3333_p1 = scmp.eq.s32.totalorder %s2582_s22, 0 }
   0x9   : > { %p157_p3 = scmp.eq.s32.totalorder %s1881_s23, 1  ;;  %p1882_p5 = scmp.ge.s32.totalorder %s2478_s21, 1 }
   0xa   : > { %p2591_p4 = por %p3333_p1, %p43_p0  ;;  %p164_p7 = scmp.lt.s32.totalorder %s2478_s21, 3 }
   0xb   : > { %p2596_p6 = por %p157_p3, %p43_p0  ;;  %s2480_s27 = smov [#allocation6]  }
   0xc   : > { %s3336_s24 = scalar_select %p2591_p4, 1, 0 }
   0xd   : > { %s3337_s25 = scalar_select %p2596_p6, 1, 0 }
   0xe   : > { %p2601_p8 = pnand %p1882_p5, %p164_p7  ;;  %s176_s28 = sshll.u32 %s2480_s27, 4  ;;  %s2605_s28 = int_to_ptr.vmem [resolvable:$true] %s176_s28 }
   0xf   : > { %s2481_s30 = smov [#allocation8]   ;;  %s2482_s7 = smov [#allocation9]  }
  0x10   : > { %s3338_s26 = scalar_select %p2601_p8, 1, 0 }
  0x11   : > { %p2177_p9 = pneg %p2601_p8  ;;  %s189_s6 = sshll.u32 %s2481_s30, 4  ;;  %s2616_s6 = int_to_ptr.vmem [resolvable:$true] %s189_s6 }
  0x12   : > { %s2618_s8 = sshll.u32 %s2482_s7, 4  ;;  %s2290_s11 = scalar_lea.hbm %s3328_s1, 2048  ;;  %s203_s8 = int_to_ptr.vmem [resolvable:$true] %s2618_s8 }
  0x13   : > { %p2612_p11 = pnand %p2177_p9, %p3333_p1  ;;  %p2291_p12 = scmp.ne.s32.totalorder %s3328_s1, %s2290_s11 }
  0x14   : > { %p2297_p5 = scmp.lt.u32.totalorder %s2290_s11, %s3328_s1 }
  0x15   : > { %p2628_p13 = pneg %p2612_p11 }
  0x17   : > { %p2293_p0 = pnand %p2628_p13, %p2291_p12 }
  0x19   : > { %p2294_p3 = pneg %p2293_p0 }
  0x1b   : > { %p2299_p7 = pnand %p2297_p5, %p2294_p3 }
  0x1d   : > { %2302 = shalt.err (!%p2299_p7)
}
  0x1e   : > { %s2303_s17 = scalar_lea.vmem %s2605_s28, 2048  ;;  %p2311_p2 = scmp.lt.s32.totalorder %s2605_s28, %s2605_s28 }
  0x1f   : > { %p2304_p9 = scmp.ne.s32.totalorder %s2605_s28, %s2303_s17  ;;  %p2312_p6 = scmp.lt.s32.totalorder %s2303_s17, %s2303_s17 }
  0x21   : > { %p2306_p10 = pnand %p2304_p9, %p2628_p13  ;;  %p2313_p12 = por %p2312_p6, %p2311_p2 }
  0x23   : > { %p2307_p1 = pneg %p2306_p10 }
  0x25   : > { %p2314_p0 = pnand %p2313_p12, %p2307_p1 }
  0x27   : > { %2317 = shalt.err (!%p2314_p0)
}
  0x28   : > { %s2483_s23 = smov 128   ;;  %s2484_s27 = smov 8  }
  0x29   : > { %2180 = dma.hbm_to_vmem [thread:$0]  (!%p2612_p11), %s3328_s1, 2048, %s2605_s28, [#allocation7], %s2483_s23, %s2483_s23, %s2484_s27  }
  0x2a   : > { %s2318_s11 = scalar_lea.hbm %s3329_s2, 2048 }
  0x2b   : > { %p2319_p1 = scmp.ne.s32.totalorder %s3329_s2, %s2318_s11  ;;  %p2325_p10 = scmp.lt.u32.totalorder %s2318_s11, %s3329_s2 }
  0x2d   : > { %p2321_p2 = pnand %p2319_p1, %p2628_p13 }
  0x2f   : > { %p2322_p6 = pneg %p2321_p2 }
  0x31   : > { %p2327_p3 = pnand %p2325_p10, %p2322_p6 }
  0x33   : > { %2330 = shalt.err (!%p2327_p3)
}
  0x34   : > { %s2331_s28 = scalar_lea.vmem %s2616_s6, 2048  ;;  %p2339_p12 = scmp.lt.s32.totalorder %s2616_s6, %s2616_s6 }
  0x35   : > { %p2332_p5 = scmp.ne.s32.totalorder %s2616_s6, %s2331_s28  ;;  %p2340_p0 = scmp.lt.s32.totalorder %s2331_s28, %s2331_s28 }
  0x37   : > { %p2334_p7 = pnand %p2332_p5, %p2628_p13  ;;  %p2341_p1 = por %p2340_p0, %p2339_p12 }
  0x39   : > { %p2335_p9 = pneg %p2334_p7 }
  0x3b   : > { %p2342_p2 = pnand %p2341_p1, %p2335_p9 }
  0x3d   : > { %2345 = shalt.err (!%p2342_p2)
}
  0x3e   : > { %2183 = dma.hbm_to_vmem [thread:$0]  (!%p2612_p11), %s3329_s2, 2048, %s2616_s6, [#allocation7], %s2483_s23, %s2483_s23, %s2484_s27  }
  0x3f   : > { %s2346_s10 = scalar_lea.hbm %s3330_s3, 2048 }
  0x40   : > { %p2347_p6 = scmp.ne.s32.totalorder %s3330_s3, %s2346_s10  ;;  %p2353_p5 = scmp.lt.u32.totalorder %s2346_s10, %s3330_s3 }
  0x42   : > { %p2349_p10 = pnand %p2347_p6, %p2628_p13 }
  0x44   : > { %p2350_p3 = pneg %p2349_p10 }
  0x46   : > { %p2355_p7 = pnand %p2353_p5, %p2350_p3 }
  0x48   : > { %2358 = shalt.err (!%p2355_p7)
}
  0x49   : > { %s2359_s16 = scalar_lea.vmem %s203_s8, 2048  ;;  %p2367_p1 = scmp.lt.s32.totalorder %s203_s8, %s203_s8 }
  0x4a   : > { %p2360_p9 = scmp.ne.s32.totalorder %s203_s8, %s2359_s16  ;;  %p2368_p2 = scmp.lt.s32.totalorder %s2359_s16, %s2359_s16 }
  0x4c   : > { %p2362_p12 = pnand %p2360_p9, %p2628_p13  ;;  %p2369_p4 = por %p2368_p2, %p2367_p1 }
  0x4e   : > { %p2363_p0 = pneg %p2362_p12 }
  0x50   : > { %p2370_p8 = pnand %p2369_p4, %p2363_p0 }
  0x52   : > { %2373 = shalt.err (!%p2370_p8)
}
  0x53   : > { %2186 = dma.hbm_to_vmem [thread:$0]  (!%p2612_p11), %s3330_s3, 2048, %s203_s8, [#allocation10], %s2483_s23, %s2483_s23, %s2484_s27  }
  0x54   : > { %s2701_s14 = sadd.s32 1, %s2478_s21   ;;  %s30_s17 = sadd.s32 1, %s2474_s20 }
  0x55   : > { %s27_s29 = ssub.s32 %s2478_s21, %s2701_s14  ;;  %p37_p8 = scmp.ne.s32.totalorder %s2474_s20, %s2470_s19 }
  0x56   : > { %p28_p4 = scmp.eq.s32.totalorder %s27_s29, 0  ;;  %p38_p13 = scmp.eq.s32.totalorder %s2478_s21, 0 }
  0x57   : > { %p2198_p6 = scmp.lt.s32.totalorder %s2478_s21, 2  ;;  %p3341_p3 = scmp.eq.s32.totalorder %s2582_s22, 1 }
  0x58   : > { %s2711_s30 = scalar_select %p28_p4, %s2474_s20, %s30_s17  }
  0x59   : > { %p39_p10 = por %p38_p13, %p37_p8  ;;  %p2715_p5 = por %p3341_p3, %p37_p8 }
  0x5a   : > { %s219_s9 = sand.u32 1, %s2474_s20   ;;  %s1904_s10 = sshll.u32 %s2478_s21, 9 }
  0x5b   : > { %s1887_s8 = sshll.u32 %s219_s9, 5  ;;  %s2724_s11 = scalar_lea.hbm %s3327_s0, %s1904_s10 }
  0x5c   : > { %s223_s12 = scalar_lea.vmem [#allocation3], %s1887_s8  ;;  %p2726_p11 = pnand %p2198_p6, %p39_p10 }
  0x5d   : > { %s231_s13 = sshll.u32 %s223_s12, 4  ;;  %s2732_s16 = scalar_lea.sflag [#allocation4], %s219_s9  ;;  %s2730_s13 = int_to_ptr.vmem [resolvable:$true] %s231_s13 }
  0x5e   : > { %s2374_s6 = scalar_lea.hbm %s2724_s11, 512  ;;  %p2376_p9 = pneg %p2726_p11 }
  0x5f   : > { %p2375_p7 = scmp.ne.s32.totalorder %s2724_s11, %s2374_s6  ;;  %s2379_s17 = scalar_lea.hbm %s3327_s0, 1024 }
  0x60   : > { %p2380_p1 = scmp.lt.u32.totalorder %s2724_s11, %s3327_s0  ;;  %p2381_p2 = scmp.lt.u32.totalorder %s2379_s17, %s2374_s6 }
  0x61   : > { %p2377_p12 = pnand %p2376_p9, %p2375_p7  ;;  %p2383_p8 = scmp.lt.u32.totalorder %s2374_s6, %s2724_s11 }
  0x62   : > { %p2382_p4 = por %p2381_p2, %p2380_p1 }
  0x63   : > { %p2378_p0 = pneg %p2377_p12 }
  0x64   : > { %p2384_p13 = por %p2383_p8, %p2382_p4 }
  0x66   : > { %p2385_p6 = pnand %p2384_p13, %p2378_p0 }
  0x68   : > { %2388 = shalt.err (!%p2385_p6)
}
  0x69   : > { %s2389_s9 = scalar_lea.vmem %s2730_s13, 512  ;;  %s2485_s23 = smov [#allocation3]  }
  0x6a   : > { %p2390_p10 = scmp.ne.s32.totalorder %s2730_s13, %s2389_s9  ;;  %s2394_s27 = sshll.u32 %s2485_s23, 4  ;;  %s2395_s27 = int_to_ptr.vmem [resolvable:$false] %s2394_s27 }
  0x6b   : > { %s2396_s12 = scalar_lea.vmem %s2395_s27, 1024  ;;  %p2397_p12 = scmp.lt.s32.totalorder %s2730_s13, %s2395_s27 }
  0x6c   : > { %p2392_p3 = pnand %p2390_p10, %p2376_p9  ;;  %p2398_p1 = scmp.lt.s32.totalorder %s2396_s12, %s2389_s9 }
  0x6e   : > { %p2393_p7 = pneg %p2392_p3  ;;  %p2399_p2 = por %p2398_p1, %p2397_p12 }
  0x70   : > { %p2400_p4 = pnand %p2399_p2, %p2393_p7 }
  0x72   : > { %2403 = shalt.err (!%p2400_p4)
}
  0x73   : > { %s2486_s6 = smov 256   ;;  %s2487_s28 = smov 16  }
  0x74   : > { %2190 = dma.hbm_to_vmem [thread:$0]  (!%p2726_p11), %s2724_s11, 512, %s2730_s13, %s2732_s16, %s2486_s6, %s2486_s6, %s2487_s28  }
  0x75   : > { %p3344_p9 = scmp.ne.s32.totalorder %s3338_s26, 0 }
  0x76   : > { %s2763_s29 = sand.u32 (!%p3344_p9), 1, %s2470_s19   ;;  %p3345_p0 = scmp.ne.s32.totalorder (!%p3344_p9), %s3336_s24, 0 }
  0x77   : > { %243 = sbr.rel (%p3344_p9) target bundleno = 4220 (0x107c), region = 40  ;;  %s1892_s17 = sshll.u32 (!%p3344_p9), %s2763_s29, 5 }
  0x78   : > { %s246_s10 = scalar_lea.sflag (!%p3344_p9), [#allocation4], %s2763_s29  ;;  %s2767_s8 = scalar_lea.vmem (!%p3344_p9), [#allocation3], %s1892_s17 }
  0x7e   : > { %2449 = dma.done.wait (%p3345_p0), %s246_s10, 512  }
  0x7f   : > { %2451 = vsyncadd (%p3345_p0), %s246_s10, 4294966784  ;;  %p3346_p11 = scmp.eq.s32.totalorder %s2582_s22, 0 }
  0x81   : > { %2453 = dma.done.wait (%p3346_p11), [#allocation7], 4096   ;;  %p3347_p8 = pmov %p3346_p11 }
  0x83   : > { %2455 = vsyncadd (%p3347_p8), [#allocation7], 4294963200  ;;  %p3348_p13 = pmov %p3347_p8 }
  0x84   : > { %p3349_p6 = pmov %p3347_p8 }
  0x85   : > { %2457 = dma.done.wait (%p3348_p13), [#allocation10], 2048  }
  0x86   : > { %2459 = vsyncadd (%p3349_p6), [#allocation10], 4294965248  ;;  %v2488_v0 = vmov 0.0   ;;  %v2782_v1 = vld [vmem:[%s2767_s8] sm:$0xff]  ;;  %v2785_v2 = vld [vmem:[%s2767_s8 + $0x10] sm:$0xff]  ;;  %s2489_s24 = smov 127  }
  0x87   : > { %385 = vst [vmem:[#allocation2] sm:$0xff] %v2488_v0  ;;  %386 = vst [vmem:[#allocation2 + $0x8] sm:$0xff] %v2488_v0  ;;  %v292_v3 = vmul.f32 %v2782_v1, %v2782_v1  ;;  %402 = vrot.lane.b32.xlu1 %v2782_v1, %s2489_s24  ;;  %v2791_v4 = vld [vmem:[%s2767_s8 + $0x8] sm:$0xff]  ;;  %v2795_v5 = vmul.f32 %v2785_v2, %v2785_v2  ;;  %v2799_v6 = vld [vmem:[%s2767_s8 + $0x18] sm:$0xff]  ;;  %s2490_s26 = smov 126   ;;  %s2491_s11 = smov 125  }
  0x88   : > { %vm410_vm0 = vcmask 1039360   ;;  %vm391_vm1 = vcmask 7168   ;;  %vm440_vm2 = vcmask 1031168   ;;  %vm421_vm3 = vcmask 15368   ;;  %s2492_s13 = smov 124   ;;  %s2493_s15 = smov 123  }
  0x89   : > { %387 = vadd.xlane.f32.xlu0 %v292_v3  ;;  %1992 = vmatprep.mubr.f32.mxu0 %v292_v3  ;;  %vm451_vm4 = vcmask 23568   ;;  %vm470_vm5 = vcmask 1022976   ;;  %vm481_vm6 = vcmask 31768   ;;  %vm500_vm7 = vcmask 1014784   ;;  %s2494_s16 = smov 122   ;;  %s2495_s9 = smov 121  }
  0x8a   : > { %vm511_vm8 = vcmask 39968   ;;  %vm530_vm9 = vcmask 1006592   ;;  %vm541_vm10 = vcmask 48168   ;;  %vm560_vm11 = vcmask 998400   ;;  %s2496_s23 = smov 120   ;;  %s2497_s27 = smov 119  }
  0x8b   : > { %404 = vrot.lane.b32.xlu1 %v2791_v4, %s2489_s24  ;;  %vm571_vm12 = vcmask 56368   ;;  %vm590_vm13 = vcmask 990208   ;;  %vm601_vm14 = vcmask 64568   ;;  %vm620_vm15 = vcmask 982016   ;;  %s2498_s12 = smov 118   ;;  %s2499_s6 = smov 117  }
  0x8c   : > { %s2500_s28 = smov 116   ;;  %s2501_s17 = smov 115  }
  0x8d   : > { %389 = vadd.xlane.f32.xlu0 %v2795_v5  ;;  %s2502_s10 = smov 114  }
  0x8f   : > { %408 = vrot.lane.b32.xlu1 %v2799_v6, %s2489_s24 }
  0x93   : > { %432 = vrot.lane.b32.xlu1 %v2782_v1, %s2490_s26 }
  0x97   : > { %436 = vrot.lane.b32.xlu1 %v2785_v2, %s2490_s26 }
  0x9b   : > { %438 = vrot.lane.b32.xlu1 %v2799_v6, %s2490_s26 }
  0x9f   : > { %462 = vrot.lane.b32.xlu1 %v2782_v1, %s2491_s11 }
  0xa3   : > { %406 = vrot.lane.b32.xlu0 %v2785_v2, %s2489_s24  ;;  %s2503_s24 = smov 113  }
  0xa7   : > { %434 = vrot.lane.b32.xlu0 %v2791_v4, %s2490_s26  ;;  %s2504_s26 = smov 112  }
  0xf9   : > { %v403_v7 = vpop.permute.xlu1 %402 }
  0xfd   : > { %v405_v8 = vpop.permute.xlu1 %404 }
  0xfe   : > { %v411_v9 = vsel %vm410_vm0, %v403_v7, %v405_v8 }
  0xff   : > { %v415_v10 = vmul.f32 %v411_v9, %v2782_v1 }
 0x101   : > { %417 = vadd.xlane.f32.xlu1 %v415_v10  ;;  %v409_v11 = vpop.permute.xlu1 %408 }
 0x105   : > { %v433_v12 = vpop.permute.xlu1 %432 }
 0x109   : > { %v437_v14 = vpop.permute.xlu1 %436 }
 0x10d   : > { %v439_v16 = vpop.permute.xlu1 %438 }
 0x10e   : > { %v442_v19 = vsel %vm440_vm2, %v437_v14, %v439_v16 }
 0x10f   : > { %v446_v22 = vmul.f32 %v442_v19, %v2785_v2 }
 0x111   : > { %v463_v25 = vpop.permute.xlu1 %462 }
 0x116   : > { %v388_v13 = vpop.xlane.xlu0 %387 }
 0x117   : > { %392 = vst.msk [vmem:[#allocation2] sm:$0xff] %vm391_vm1, %v388_v13 }
 0x11a   : > { %v390_v15 = vpop.xlane.xlu0 %389 }
 0x11b   : > { %393 = vst.msk [vmem:[#allocation2 + $0x8] sm:$0xff] %vm391_vm1, %v390_v15  ;;  %vm650_vm1 = vcmask 973824  }
 0x11e   : > { %v407_v17 = vpop.permute.xlu0 %406 }
 0x11f   : > { %v412_v18 = vsel %vm410_vm0, %v407_v17, %v409_v11  ;;  %vm631_vm0 = vcmask 72768  }
 0x120   : > { %v416_v20 = vmul.f32 %v412_v18, %v2785_v2 }
 0x122   : > { %419 = vadd.xlane.f32.xlu0 %v416_v20  ;;  %v435_v21 = vpop.permute.xlu0 %434 }
 0x123   : > { %v441_v23 = vsel %vm440_vm2, %v433_v12, %v435_v21  ;;  %vm661_vm2 = vcmask 80968  }
 0x124   : > { %v445_v24 = vmul.f32 %v441_v23, %v2782_v1 }
 0x126   : > { %449 = vadd.xlane.f32.xlu0 %v446_v22  ;;  %447 = vadd.xlane.f32.xlu1 %v445_v24 }
 0x137   : > { %466 = vrot.lane.b32.xlu1 %v2785_v2, %s2491_s11 }
 0x13b   : > { %468 = vrot.lane.b32.xlu1 %v2799_v6, %s2491_s11 }
 0x13c   : > { %464 = vrot.lane.b32.xlu0 %v2791_v4, %s2491_s11  ;;  %s2505_s11 = smov 111  }
 0x18e   : > { %v418_v26 = vpop.xlane.xlu1 %417 }
 0x18f   : > { %422 = vst.msk [vmem:[#allocation2] sm:$0xff] %vm421_vm3, %v418_v26 }
 0x1af   : > { %v420_v27 = vpop.xlane.xlu0 %419 }
 0x1b0   : > { %423 = vst.msk [vmem:[#allocation2 + $0x8] sm:$0xff] %vm421_vm3, %v420_v27  ;;  %vm680_vm3 = vcmask 965632  }
 0x1b3   : > { %v448_v28 = vpop.xlane.xlu1 %447  ;;  %v450_v29 = vpop.xlane.xlu0 %449 }
 0x1b4   : > { %452 = vst.msk [vmem:[#allocation2] sm:$0xff] %vm451_vm4, %v448_v28  ;;  %453 = vst.msk [vmem:[#allocation2 + $0x8] sm:$0xff] %vm451_vm4, %v450_v29  ;;  %vm691_vm4 = vcmask 89168  }
 0x1b7   : > { %v467_v30 = vpop.permute.xlu1 %466  ;;  %v465_v31 = vpop.permute.xlu0 %464 }
 0x1b8   : > { %v471_v32 = vsel %vm470_vm5, %v463_v25, %v465_v31 }
 0x1b9   : > { %v475_v33 = vmul.f32 %v471_v32, %v2782_v1 }
 0x1bb   : > { %v469_v34 = vpop.permute.xlu1 %468  ;;  %477 = vadd.xlane.f32.xlu1 %v475_v33 }
 0x1bc   : > { %v472_v35 = vsel %vm470_vm5, %v467_v30, %v469_v34  ;;  %vm710_vm5 = vcmask 957440  }
 0x1bd   : > { %v476_v36 = vmul.f32 %v472_v35, %v2785_v2 }
 0x1bf   : > { %479 = vadd.xlane.f32.xlu0 %v476_v36 }
 0x1cc   : > { %494 = vrot.lane.b32.xlu1 %v2791_v4, %s2492_s13 }
 0x1d0   : > { %496 = vrot.lane.b32.xlu1 %v2785_v2, %s2492_s13 }
 0x1d5   : > { %492 = vrot.lane.b32.xlu0 %v2782_v1, %s2492_s13 }
 0x1d9   : > { %498 = vrot.lane.b32.xlu0 %v2799_v6, %s2492_s13  ;;  %s2506_s13 = smov 110  }
 0x248   : > { %v478_v37 = vpop.xlane.xlu1 %477 }
 0x249   : > { %482 = vst.msk [vmem:[#allocation2] sm:$0xff] %vm481_vm6, %v478_v37 }
 0x24c   : > { %v480_v38 = vpop.xlane.xlu0 %479  ;;  %v495_v39 = vpop.permute.xlu1 %494 }
 0x24d   : > { %483 = vst.msk [vmem:[#allocation2 + $0x8] sm:$0xff] %vm481_vm6, %v480_v38  ;;  %vm721_vm6 = vcmask 97368  }
 0x250   : > { %v493_v40 = vpop.permute.xlu0 %492  ;;  %v497_v42 = vpop.permute.xlu1 %496 }
 0x251   : > { %v501_v41 = vsel %vm500_vm7, %v493_v40, %v495_v39 }
 0x252   : > { %v505_v43 = vmul.f32 %v501_v41, %v2782_v1 }
 0x254   : > { %507 = vadd.xlane.f32.xlu1 %v505_v43  ;;  %v499_v44 = vpop.permute.xlu0 %498 }
 0x255   : > { %v502_v45 = vsel %vm500_vm7, %v497_v42, %v499_v44  ;;  %vm740_vm7 = vcmask 949248  }
 0x256   : > { %v506_v46 = vmul.f32 %v502_v45, %v2785_v2 }
 0x258   : > { %509 = vadd.xlane.f32.xlu0 %v506_v46 }
 0x265   : > { %524 = vrot.lane.b32.xlu1 %v2791_v4, %s2493_s15 }
 0x269   : > { %526 = vrot.lane.b32.xlu1 %v2785_v2, %s2493_s15 }
 0x26e   : > { %522 = vrot.lane.b32.xlu0 %v2782_v1, %s2493_s15 }
 0x272   : > { %528 = vrot.lane.b32.xlu0 %v2799_v6, %s2493_s15  ;;  %s2507_s15 = smov 109  }
 0x2e1   : > { %v508_v47 = vpop.xlane.xlu1 %507 }
 0x2e2   : > { %512 = vst.msk [vmem:[#allocation2] sm:$0xff] %vm511_vm8, %v508_v47 }
 0x2e5   : > { %v510_v48 = vpop.xlane.xlu0 %509  ;;  %v525_v49 = vpop.permute.xlu1 %524 }
 0x2e6   : > { %513 = vst.msk [vmem:[#allocation2 + $0x8] sm:$0xff] %vm511_vm8, %v510_v48  ;;  %vm751_vm8 = vcmask 105568  }
 0x2e9   : > { %v523_v50 = vpop.permute.xlu0 %522  ;;  %v527_v52 = vpop.permute.xlu1 %526 }
 0x2ea   : > { %v531_v51 = vsel %vm530_vm9, %v523_v50, %v525_v49 }
 0x2eb   : > { %v535_v53 = vmul.f32 %v531_v51, %v2782_v1 }
 0x2ed   : > { %537 = vadd.xlane.f32.xlu1 %v535_v53  ;;  %v529_v54 = vpop.permute.xlu0 %528 }
 0x2ee   : > { %v532_v55 = vsel %vm530_vm9, %v527_v52, %v529_v54  ;;  %vm770_vm9 = vcmask 941056  }
 0x2ef   : > { %v536_v56 = vmul.f32 %v532_v55, %v2785_v2 }
 0x2f1   : > { %539 = vadd.xlane.f32.xlu0 %v536_v56 }
 0x2fe   : > { %554 = vrot.lane.b32.xlu1 %v2791_v4, %s2494_s16 }
 0x302   : > { %556 = vrot.lane.b32.xlu1 %v2785_v2, %s2494_s16 }
 0x307   : > { %552 = vrot.lane.b32.xlu0 %v2782_v1, %s2494_s16 }
 0x30b   : > { %558 = vrot.lane.b32.xlu0 %v2799_v6, %s2494_s16  ;;  %s2508_s16 = smov 108  }
 0x37a   : > { %v538_v57 = vpop.xlane.xlu1 %537 }
 0x37b   : > { %542 = vst.msk [vmem:[#allocation2] sm:$0xff] %vm541_vm10, %v538_v57 }
 0x37e   : > { %v540_v58 = vpop.xlane.xlu0 %539  ;;  %v555_v59 = vpop.permute.xlu1 %554 }
 0x37f   : > { %543 = vst.msk [vmem:[#allocation2 + $0x8] sm:$0xff] %vm541_vm10, %v540_v58  ;;  %vm781_vm10 = vcmask 113768  }
 0x382   : > { %v553_v60 = vpop.permute.xlu0 %552  ;;  %v557_v62 = vpop.permute.xlu1 %556 }
 0x383   : > { %v561_v61 = vsel %vm560_vm11, %v553_v60, %v555_v59 }
 0x384   : > { %v565_v63 = vmul.f32 %v561_v61, %v2782_v1 }
 0x386   : > { %567 = vadd.xlane.f32.xlu1 %v565_v63  ;;  %v559_v0 = vpop.permute.xlu0 %558 }
 0x387   : > { %v562_v3 = vsel %vm560_vm11, %v557_v62, %v559_v0  ;;  %vm800_vm11 = vcmask 932864  }
 0x388   : > { %v566_v7 = vmul.f32 %v562_v3, %v2785_v2 }
 0x38a   : > { %569 = vadd.xlane.f32.xlu0 %v566_v7 }
 0x397   : > { %584 = vrot.lane.b32.xlu1 %v2791_v4, %s2495_s9 }
 0x39b   : > { %586 = vrot.lane.b32.xlu1 %v2785_v2, %s2495_s9 }
 0x3a0   : > { %582 = vrot.lane.b32.xlu0 %v2782_v1, %s2495_s9 }
 0x3a4   : > { %588 = vrot.lane.b32.xlu0 %v2799_v6, %s2495_s9  ;;  %s2509_s9 = smov 107  }
 0x413   : > { %v568_v8 = vpop.xlane.xlu1 %567 }
 0x414   : > { %572 = vst.msk [vmem:[#allocation2] sm:$0xff] %vm571_vm12, %v568_v8 }
 0x417   : > { %v570_v9 = vpop.xlane.xlu0 %569  ;;  %v585_v10 = vpop.permute.xlu1 %584 }
 0x418   : > { %573 = vst.msk [vmem:[#allocation2 + $0x8] sm:$0xff] %vm571_vm12, %v570_v9  ;;  %vm811_vm12 = vcmask 121968  }
 0x41b   : > { %v583_v11 = vpop.permute.xlu0 %582  ;;  %v587_v13 = vpop.permute.xlu1 %586 }
 0x41c   : > { %v591_v12 = vsel %vm590_vm13, %v583_v11, %v585_v10 }
 0x41d   : > { %v595_v14 = vmul.f32 %v591_v12, %v2782_v1 }
 0x41f   : > { %597 = vadd.xlane.f32.xlu1 %v595_v14  ;;  %v589_v15 = vpop.permute.xlu0 %588 }
 0x420   : > { %v592_v16 = vsel %vm590_vm13, %v587_v13, %v589_v15  ;;  %vm830_vm13 = vcmask 924672  }
 0x421   : > { %v596_v17 = vmul.f32 %v592_v16, %v2785_v2 }
 0x423   : > { %599 = vadd.xlane.f32.xlu0 %v596_v17 }
 0x430   : > { %614 = vrot.lane.b32.xlu1 %v2791_v4, %s2496_s23 }
 0x434   : > { %616 = vrot.lane.b32.xlu1 %v2785_v2, %s2496_s23 }
 0x439   : > { %612 = vrot.lane.b32.xlu0 %v2782_v1, %s2496_s23 }
 0x43d   : > { %618 = vrot.lane.b32.xlu0 %v2799_v6, %s2496_s23  ;;  %s2510_s23 = smov 106  }
 0x4ac   : > { %v598_v18 = vpop.xlane.xlu1 %597 }
 0x4ad   : > { %602 = vst.msk [vmem:[#allocation2] sm:$0xff] %vm601_vm14, %v598_v18 }
 0x4b0   : > { %v600_v19 = vpop.xlane.xlu0 %599  ;;  %v615_v20 = vpop.permute.xlu1 %614 }
 0x4b1   : > { %603 = vst.msk [vmem:[#allocation2 + $0x8] sm:$0xff] %vm601_vm14, %v600_v19  ;;  %vm841_vm14 = vcmask 130168  }
 0x4b4   : > { %v613_v21 = vpop.permute.xlu0 %612  ;;  %v617_v23 = vpop.permute.xlu1 %616 }
 0x4b5   : > { %v621_v22 = vsel %vm620_vm15, %v613_v21, %v615_v20 }
 0x4b6   : > { %v625_v24 = vmul.f32 %v621_v22, %v2782_v1 }
 0x4b8   : > { %627 = vadd.xlane.f32.xlu1 %v625_v24  ;;  %v619_v25 = vpop.permute.xlu0 %618 }
 0x4b9   : > { %v622_v26 = vsel %vm620_vm15, %v617_v23, %v619_v25  ;;  %vm860_vm15 = vcmask 916480  }
 0x4ba   : > { %v626_v27 = vmul.f32 %v622_v26, %v2785_v2 }
 0x4bc   : > { %629 = vadd.xlane.f32.xlu0 %v626_v27 }
 0x4c9   : > { %644 = vrot.lane.b32.xlu1 %v2791_v4, %s2497_s27 }
 0x4cd   : > { %646 = vrot.lane.b32.xlu1 %v2785_v2, %s2497_s27 }
 0x4d2   : > { %642 = vrot.lane.b32.xlu0 %v2782_v1, %s2497_s27 }
 0x4d6   : > { %648 = vrot.lane.b32.xlu0 %v2799_v6, %s2497_s27  ;;  %s2511_s27 = smov 105  }
 0x545   : > { %v628_v28 = vpop.xlane.xlu1 %627 }
 0x546   : > { %632 = vst.msk [vmem:[#allocation2] sm:$0xff] %vm631_vm0, %v628_v28 }
 0x549   : > { %v630_v29 = vpop.xlane.xlu0 %629  ;;  %v645_v30 = vpop.permute.xlu1 %644 }
 0x54a   : > { %633 = vst.msk [vmem:[#allocation2 + $0x8] sm:$0xff] %vm631_vm0, %v630_v29  ;;  %vm871_vm0 = vcmask 138368  }
 0x54d   : > { %v643_v31 = vpop.permute.xlu0 %642  ;;  %v647_v33 = vpop.permute.xlu1 %646 }
 0x54e   : > { %v651_v32 = vsel %vm650_vm1, %v643_v31, %v645_v30 }
 0x54f   : > { %v655_v34 = vmul.f32 %v651_v32, %v2782_v1 }
 0x551   : > { %657 = vadd.xlane.f32.xlu1 %v655_v34  ;;  %v649_v35 = vpop.permute.xlu0 %648 }
 0x552   : > { %v652_v36 = vsel %vm650_vm1, %v647_v33, %v649_v35  ;;  %vm890_vm1 = vcmask 908288  }
 0x553   : > { %v656_v37 = vmul.f32 %v652_v36, %v2785_v2 }
 0x555   : > { %659 = vadd.xlane.f32.xlu0 %v656_v37 }
 0x562   : > { %674 = vrot.lane.b32.xlu1 %v2791_v4, %s2498_s12 }
 0x566   : > { %676 = vrot.lane.b32.xlu1 %v2785_v2, %s2498_s12 }
 0x56b   : > { %672 = vrot.lane.b32.xlu0 %v2782_v1, %s2498_s12 }
 0x56f   : > { %678 = vrot.lane.b32.xlu0 %v2799_v6, %s2498_s12  ;;  %s2512_s12 = smov 104  }
 0x5de   : > { %v658_v38 = vpop.xlane.xlu1 %657 }
 0x5df   : > { %662 = vst.msk [vmem:[#allocation2] sm:$0xff] %vm661_vm2, %v658_v38 }
 0x5e2   : > { %v660_v39 = vpop.xlane.xlu0 %659  ;;  %v675_v40 = vpop.permute.xlu1 %674 }
 0x5e3   : > { %663 = vst.msk [vmem:[#allocation2 + $0x8] sm:$0xff] %vm661_vm2, %v660_v39  ;;  %vm901_vm2 = vcmask 146568  }
 0x5e6   : > { %v673_v41 = vpop.permute.xlu0 %672  ;;  %v677_v43 = vpop.permute.xlu1 %676 }
 0x5e7   : > { %v681_v42 = vsel %vm680_vm3, %v673_v41, %v675_v40 }
 0x5e8   : > { %v685_v44 = vmul.f32 %v681_v42, %v2782_v1 }
 0x5ea   : > { %687 = vadd.xlane.f32.xlu1 %v685_v44  ;;  %v679_v45 = vpop.permute.xlu0 %678 }
 0x5eb   : > { %v682_v46 = vsel %vm680_vm3, %v677_v43, %v679_v45  ;;  %vm920_vm3 = vcmask 900096  }
 0x5ec   : > { %v686_v47 = vmul.f32 %v682_v46, %v2785_v2 }
 0x5ee   : > { %689 = vadd.xlane.f32.xlu0 %v686_v47 }
 0x5fb   : > { %704 = vrot.lane.b32.xlu1 %v2791_v4, %s2499_s6 }
 0x5ff   : > { %706 = vrot.lane.b32.xlu1 %v2785_v2, %s2499_s6 }
 0x604   : > { %702 = vrot.lane.b32.xlu0 %v2782_v1, %s2499_s6 }
 0x608   : > { %708 = vrot.lane.b32.xlu0 %v2799_v6, %s2499_s6  ;;  %s2513_s6 = smov 103  }
 0x677   : > { %v688_v48 = vpop.xlane.xlu1 %687 }
 0x678   : > { %692 = vst.msk [vmem:[#allocation2] sm:$0xff] %vm691_vm4, %v688_v48 }
 0x67b   : > { %v690_v49 = vpop.xlane.xlu0 %689  ;;  %v705_v50 = vpop.permute.xlu1 %704 }
 0x67c   : > { %693 = vst.msk [vmem:[#allocation2 + $0x8] sm:$0xff] %vm691_vm4, %v690_v49  ;;  %vm931_vm4 = vcmask 154768  }
 0x67f   : > { %v703_v51 = vpop.permute.xlu0 %702  ;;  %v707_v53 = vpop.permute.xlu1 %706 }
 0x680   : > { %v711_v52 = vsel %vm710_vm5, %v703_v51, %v705_v50 }
 0x681   : > { %v715_v54 = vmul.f32 %v711_v52, %v2782_v1 }
 0x683   : > { %717 = vadd.xlane.f32.xlu1 %v715_v54  ;;  %v709_v55 = vpop.permute.xlu0 %708 }
 0x684   : > { %v712_v56 = vsel %vm710_vm5, %v707_v53, %v709_v55  ;;  %vm950_vm5 = vcmask 891904  }
 0x685   : > { %v716_v57 = vmul.f32 %v712_v56, %v2785_v2 }
 0x687   : > { %719 = vadd.xlane.f32.xlu0 %v716_v57 }
 0x694   : > { %734 = vrot.lane.b32.xlu1 %v2791_v4, %s2500_s28 }
 0x698   : > { %736 = vrot.lane.b32.xlu1 %v2785_v2, %s2500_s28 }
 0x69d   : > { %732 = vrot.lane.b32.xlu0 %v2782_v1, %s2500_s28 }
 0x6a1   : > { %738 = vrot.lane.b32.xlu0 %v2799_v6, %s2500_s28  ;;  %s2514_s28 = smov 102  }
 0x710   : > { %v718_v58 = vpop.xlane.xlu1 %717 }
 0x711   : > { %722 = vst.msk [vmem:[#allocation2] sm:$0xff] %vm721_vm6, %v718_v58 }
 0x714   : > { %v720_v59 = vpop.xlane.xlu0 %719  ;;  %v735_v60 = vpop.permute.xlu1 %734 }
 0x715   : > { %723 = vst.msk [vmem:[#allocation2 + $0x8] sm:$0xff] %vm721_vm6, %v720_v59  ;;  %vm961_vm6 = vcmask 162968  }
 0x718   : > { %v733_v61 = vpop.permute.xlu0 %732  ;;  %v737_v63 = vpop.permute.xlu1 %736 }
 0x719   : > { %v741_v62 = vsel %vm740_vm7, %v733_v61, %v735_v60 }
 0x71a   : > { %v745_v0 = vmul.f32 %v741_v62, %v2782_v1 }
 0x71c   : > { %747 = vadd.xlane.f32.xlu1 %v745_v0  ;;  %v739_v3 = vpop.permute.xlu0 %738 }
 0x71d   : > { %v742_v7 = vsel %vm740_vm7, %v737_v63, %v739_v3  ;;  %vm980_vm7 = vcmask 883712  }
 0x71e   : > { %v746_v8 = vmul.f32 %v742_v7, %v2785_v2 }
 0x720   : > { %749 = vadd.xlane.f32.xlu0 %v746_v8 }
 0x72d   : > { %764 = vrot.lane.b32.xlu1 %v2791_v4, %s2501_s17 }
 0x731   : > { %766 = vrot.lane.b32.xlu1 %v2785_v2, %s2501_s17 }
 0x736   : > { %762 = vrot.lane.b32.xlu0 %v2782_v1, %s2501_s17 }
 0x73a   : > { %768 = vrot.lane.b32.xlu0 %v2799_v6, %s2501_s17  ;;  %s2515_s17 = smov 101  }
 0x7a9   : > { %v748_v9 = vpop.xlane.xlu1 %747 }
 0x7aa   : > { %752 = vst.msk [vmem:[#allocation2] sm:$0xff] %vm751_vm8, %v748_v9 }
 0x7ad   : > { %v750_v10 = vpop.xlane.xlu0 %749  ;;  %v765_v11 = vpop.permute.xlu1 %764 }
 0x7ae   : > { %753 = vst.msk [vmem:[#allocation2 + $0x8] sm:$0xff] %vm751_vm8, %v750_v10  ;;  %vm991_vm8 = vcmask 171168  }
 0x7b1   : > { %v763_v12 = vpop.permute.xlu0 %762  ;;  %v767_v14 = vpop.permute.xlu1 %766 }
 0x7b2   : > { %v771_v13 = vsel %vm770_vm9, %v763_v12, %v765_v11 }
 0x7b3   : > { %v775_v15 = vmul.f32 %v771_v13, %v2782_v1 }
 0x7b5   : > { %777 = vadd.xlane.f32.xlu1 %v775_v15  ;;  %v769_v16 = vpop.permute.xlu0 %768 }
 0x7b6   : > { %v772_v17 = vsel %vm770_vm9, %v767_v14, %v769_v16  ;;  %vm1010_vm9 = vcmask 875520  }
 0x7b7   : > { %v776_v18 = vmul.f32 %v772_v17, %v2785_v2 }
 0x7b9   : > { %779 = vadd.xlane.f32.xlu0 %v776_v18 }
 0x7c6   : > { %794 = vrot.lane.b32.xlu1 %v2791_v4, %s2502_s10 }
 0x7ca   : > { %796 = vrot.lane.b32.xlu1 %v2785_v2, %s2502_s10 }
 0x7cf   : > { %792 = vrot.lane.b32.xlu0 %v2782_v1, %s2502_s10 }
 0x7d3   : > { %798 = vrot.lane.b32.xlu0 %v2799_v6, %s2502_s10  ;;  %s2516_s10 = smov 100  }
 0x842   : > { %v778_v19 = vpop.xlane.xlu1 %777 }
 0x843   : > { %782 = vst.msk [vmem:[#allocation2] sm:$0xff] %vm781_vm10, %v778_v19 }
 0x846   : > { %v780_v20 = vpop.xlane.xlu0 %779  ;;  %v795_v21 = vpop.permute.xlu1 %794 }
 0x847   : > { %783 = vst.msk [vmem:[#allocation2 + $0x8] sm:$0xff] %vm781_vm10, %v780_v20  ;;  %vm1021_vm10 = vcmask 179368  }
 0x84a   : > { %v793_v22 = vpop.permute.xlu0 %792  ;;  %v797_v24 = vpop.permute.xlu1 %796 }
 0x84b   : > { %v801_v23 = vsel %vm800_vm11, %v793_v22, %v795_v21 }
 0x84c   : > { %v805_v25 = vmul.f32 %v801_v23, %v2782_v1 }
 0x84e   : > { %807 = vadd.xlane.f32.xlu1 %v805_v25  ;;  %v799_v26 = vpop.permute.xlu0 %798 }
 0x84f   : > { %v802_v27 = vsel %vm800_vm11, %v797_v24, %v799_v26  ;;  %vm1040_vm11 = vcmask 867328  }
 0x850   : > { %v806_v28 = vmul.f32 %v802_v27, %v2785_v2 }
 0x852   : > { %809 = vadd.xlane.f32.xlu0 %v806_v28 }
 0x85f   : > { %824 = vrot.lane.b32.xlu1 %v2791_v4, %s2503_s24 }
 0x863   : > { %826 = vrot.lane.b32.xlu1 %v2785_v2, %s2503_s24 }
 0x868   : > { %822 = vrot.lane.b32.xlu0 %v2782_v1, %s2503_s24 }
 0x86c   : > { %828 = vrot.lane.b32.xlu0 %v2799_v6, %s2503_s24  ;;  %s2517_s24 = smov 99  }
 0x8db   : > { %v808_v29 = vpop.xlane.xlu1 %807 }
 0x8dc   : > { %812 = vst.msk [vmem:[#allocation2] sm:$0xff] %vm811_vm12, %v808_v29 }
 0x8df   : > { %v810_v30 = vpop.xlane.xlu0 %809  ;;  %v825_v31 = vpop.permute.xlu1 %824 }
 0x8e0   : > { %813 = vst.msk [vmem:[#allocation2 + $0x8] sm:$0xff] %vm811_vm12, %v810_v30  ;;  %vm1130_vm12 = vcmask 842752  }
 0x8e3   : > { %v823_v32 = vpop.permute.xlu0 %822  ;;  %v827_v34 = vpop.permute.xlu1 %826 }
 0x8e4   : > { %v831_v33 = vsel %vm830_vm13, %v823_v32, %v825_v31 }
 0x8e5   : > { %v835_v35 = vmul.f32 %v831_v33, %v2782_v1 }
 0x8e7   : > { %837 = vadd.xlane.f32.xlu1 %v835_v35  ;;  %v829_v36 = vpop.permute.xlu0 %828 }
 0x8e8   : > { %v832_v37 = vsel %vm830_vm13, %v827_v34, %v829_v36  ;;  %vm1070_vm13 = vcmask 859136  }
 0x8e9   : > { %v836_v38 = vmul.f32 %v832_v37, %v2785_v2 }
 0x8eb   : > { %839 = vadd.xlane.f32.xlu0 %v836_v38  ;;  %v2933_v38 = vld [vmem:[%s2767_s8 + $0x8] sm:$0xff] }
 0x8f8   : > { %854 = vrot.lane.b32.xlu1 %v2791_v4, %s2504_s26 }
 0x8fc   : > { %856 = vrot.lane.b32.xlu1 %v2785_v2, %s2504_s26 }
 0x901   : > { %852 = vrot.lane.b32.xlu0 %v2782_v1, %s2504_s26 }
 0x905   : > { %858 = vrot.lane.b32.xlu0 %v2799_v6, %s2504_s26  ;;  %s2518_s26 = smov 98  }
 0x974   : > { %v838_v39 = vpop.xlane.xlu1 %837 }
 0x975   : > { %842 = vst.msk [vmem:[#allocation2] sm:$0xff] %vm841_vm14, %v838_v39  ;;  %v2937_v39 = vld [vmem:[%s2767_s8 + $0x10] sm:$0xff] }
 0x978   : > { %v840_v40 = vpop.xlane.xlu0 %839  ;;  %v855_v41 = vpop.permute.xlu1 %854 }
 0x979   : > { %843 = vst.msk [vmem:[#allocation2 + $0x8] sm:$0xff] %vm841_vm14, %v840_v40  ;;  %v2941_v40 = vld [vmem:[%s2767_s8] sm:$0xff]  ;;  %vm1100_vm14 = vcmask 850944  }
 0x97c   : > { %v853_v42 = vpop.permute.xlu0 %852  ;;  %v857_v45 = vpop.permute.xlu1 %856 }
 0x97d   : > { %v861_v43 = vsel %vm860_vm15, %v853_v42, %v855_v41  ;;  %v2945_v41 = vld [vmem:[%s2767_s8 + $0x18] sm:$0xff] }
 0x97e   : > { %v865_v44 = vmul.f32 %v861_v43, %v2782_v1 }
 0x980   : > { %867 = vadd.xlane.f32.xlu1 %v865_v44  ;;  %v859_v46 = vpop.permute.xlu0 %858 }
 0x981   : > { %v862_v47 = vsel %vm860_vm15, %v857_v45, %v859_v46  ;;  %vm1051_vm15 = vcmask 187568  }
 0x982   : > { %v866_v48 = vmul.f32 %v862_v47, %v2785_v2 }
 0x984   : > { %869 = vadd.xlane.f32.xlu0 %v866_v48 }
 0x991   : > { %884 = vrot.lane.b32.xlu1 %v2791_v4, %s2505_s11 }
 0x995   : > { %886 = vrot.lane.b32.xlu1 %v2785_v2, %s2505_s11 }
 0x99a   : > { %882 = vrot.lane.b32.xlu0 %v2782_v1, %s2505_s11 }
 0x99e   : > { %888 = vrot.lane.b32.xlu0 %v2799_v6, %s2505_s11  ;;  %s2519_s11 = smov 97  }
 0xa0d   : > { %v868_v49 = vpop.xlane.xlu1 %867 }
 0xa0e   : > { %872 = vst.msk [vmem:[#allocation2] sm:$0xff] %vm871_vm0, %v868_v49 }
 0xa11   : > { %v870_v50 = vpop.xlane.xlu0 %869  ;;  %v885_v51 = vpop.permute.xlu1 %884 }
 0xa12   : > { %873 = vst.msk [vmem:[#allocation2 + $0x8] sm:$0xff] %vm871_vm0, %v870_v50  ;;  %vm1160_vm0 = vcmask 834560  }
 0xa15   : > { %v883_v52 = vpop.permute.xlu0 %882  ;;  %v887_v55 = vpop.permute.xlu1 %886 }
 0xa16   : > { %v891_v53 = vsel %vm890_vm1, %v883_v52, %v885_v51 }
 0xa17   : > { %v895_v54 = vmul.f32 %v891_v53, %v2782_v1 }
 0xa19   : > { %897 = vadd.xlane.f32.xlu1 %v895_v54  ;;  %v889_v56 = vpop.permute.xlu0 %888  ;;  %v294_v54 = vld [vmem:[#allocation6] sm:$0xff] }
 0xa1a   : > { %v892_v57 = vsel %vm890_vm1, %v887_v55, %v889_v56  ;;  %v295_v55 = vld [vmem:[#allocation6 + $0x8] sm:$0xff]  ;;  %vm1190_vm1 = vcmask 826368  }
 0xa1b   : > { %v896_v58 = vmul.f32 %v892_v57, %v2785_v2  ;;  %v2065_v56 = vpack.c.bf16 %v295_v55, %v294_v54 }
 0xa1d   : > { %899 = vadd.xlane.f32.xlu0 %v896_v58  ;;  %2066 = vmatprep.subr.bf16.mxu0 %v2065_v56  ;;  %v296_v58 = vld [vmem:[#allocation6 + $0x10] sm:$0xff] }
 0xa1e   : > { %2068 = vmatpush3.bf16.msra.mxu0 %v2065_v56 }
 0xa2a   : > { %914 = vrot.lane.b32.xlu1 %v2791_v4, %s2506_s13 }
 0xa2e   : > { %916 = vrot.lane.b32.xlu1 %v2785_v2, %s2506_s13 }
 0xa33   : > { %912 = vrot.lane.b32.xlu0 %v2782_v1, %s2506_s13 }
 0xa37   : > { %918 = vrot.lane.b32.xlu0 %v2799_v6, %s2506_s13  ;;  %s2520_s13 = smov 96  }
 0xaa6   : > { %v898_v59 = vpop.xlane.xlu1 %897 }
 0xaa7   : > { %902 = vst.msk [vmem:[#allocation2] sm:$0xff] %vm901_vm2, %v898_v59  ;;  %v297_v59 = vld [vmem:[#allocation6 + $0x18] sm:$0xff] }
 0xaaa   : > { %v900_v60 = vpop.xlane.xlu0 %899  ;;  %v915_v61 = vpop.permute.xlu1 %914 }
 0xaab   : > { %903 = vst.msk [vmem:[#allocation2 + $0x8] sm:$0xff] %vm901_vm2, %v900_v60  ;;  %v2069_v60 = vpack.c.bf16 %v297_v59, %v296_v58  ;;  %vm1220_vm2 = vcmask 818176  }
 0xaad   : > { %2070 = vmatprep.subr.bf16.mxu0 %v2069_v60 }
 0xaae   : > { %v913_v62 = vpop.permute.xlu0 %912  ;;  %v917_v3 = vpop.permute.xlu1 %916  ;;  %2072 = vmatpush3.bf16.msra.mxu0 %v2069_v60 }
 0xaaf   : > { %v921_v63 = vsel %vm920_vm3, %v913_v62, %v915_v61  ;;  %v298_v62 = vld [vmem:[#allocation6 + $0x20] sm:$0xff] }
 0xab0   : > { %v925_v0 = vmul.f32 %v921_v63, %v2782_v1  ;;  %v299_v63 = vld [vmem:[#allocation6 + $0x28] sm:$0xff] }
 0xab2   : > { %927 = vadd.xlane.f32.xlu1 %v925_v0  ;;  %v919_v7 = vpop.permute.xlu0 %918  ;;  %v2073_v0 = vpack.c.bf16 %v299_v63, %v298_v62 }
 0xab3   : > { %v922_v8 = vsel %vm920_vm3, %v917_v3, %v919_v7  ;;  %v300_v7 = vld [vmem:[#allocation6 + $0x30] sm:$0xff]  ;;  %vm1250_vm3 = vcmask 809984  }
 0xab4   : > { %v926_v9 = vmul.f32 %v922_v8, %v2785_v2  ;;  %2074 = vmatprep.subr.bf16.mxu0 %v2073_v0  ;;  %v301_v8 = vld [vmem:[#allocation6 + $0x38] sm:$0xff] }
 0xab5   : > { %2076 = vmatpush3.bf16.msra.mxu0 %v2073_v0 }
 0xab6   : > { %929 = vadd.xlane.f32.xlu0 %v926_v9  ;;  %v2077_v9 = vpack.c.bf16 %v301_v8, %v300_v7 }
 0xab8   : > { %2078 = vmatprep.subr.bf16.mxu0 %v2077_v9 }
 0xab9   : > { %2080 = vmatpush3.bf16.msra.mxu0 %v2077_v9 }
 0xac3   : > { %944 = vrot.lane.b32.xlu1 %v2791_v4, %s2507_s15 }
 0xac7   : > { %946 = vrot.lane.b32.xlu1 %v2785_v2, %s2507_s15 }
 0xacc   : > { %942 = vrot.lane.b32.xlu0 %v2782_v1, %s2507_s15 }
 0xad0   : > { %948 = vrot.lane.b32.xlu0 %v2799_v6, %s2507_s15  ;;  %s2521_s15 = smov 95  }
 0xb3f   : > { %v928_v10 = vpop.xlane.xlu1 %927 }
 0xb40   : > { %932 = vst.msk [vmem:[#allocation2] sm:$0xff] %vm931_vm4, %v928_v10 }
 0xb43   : > { %v930_v11 = vpop.xlane.xlu0 %929  ;;  %v945_v12 = vpop.permute.xlu1 %944 }
 0xb44   : > { %933 = vst.msk [vmem:[#allocation2 + $0x8] sm:$0xff] %vm931_vm4, %v930_v11  ;;  %vm1280_vm4 = vcmask 801792  }
 0xb47   : > { %v943_v13 = vpop.permute.xlu0 %942  ;;  %v947_v16 = vpop.permute.xlu1 %946 }
 0xb48   : > { %v951_v14 = vsel %vm950_vm5, %v943_v13, %v945_v12  ;;  %v302_v12 = vld [vmem:[#allocation6 + $0x40] sm:$0xff]  ;;  %v303_v13 = vld [vmem:[#allocation6 + $0x48] sm:$0xff] }
 0xb49   : > { %v955_v15 = vmul.f32 %v951_v14, %v2782_v1  ;;  %v2081_v14 = vpack.c.bf16 %v303_v13, %v302_v12 }
 0xb4b   : > { %957 = vadd.xlane.f32.xlu1 %v955_v15  ;;  %v949_v17 = vpop.permute.xlu0 %948  ;;  %2082 = vmatprep.subr.bf16.mxu0 %v2081_v14 }
 0xb4c   : > { %v952_v18 = vsel %vm950_vm5, %v947_v16, %v949_v17  ;;  %v304_v16 = vld [vmem:[#allocation6 + $0x50] sm:$0xff]  ;;  %v305_v17 = vld [vmem:[#allocation6 + $0x58] sm:$0xff]  ;;  %2084 = vmatpush3.bf16.msra.mxu0 %v2081_v14  ;;  %vm1310_vm5 = vcmask 793600  }
 0xb4d   : > { %v956_v19 = vmul.f32 %v952_v18, %v2785_v2  ;;  %v2085_v18 = vpack.c.bf16 %v305_v17, %v304_v16 }
 0xb4f   : > { %959 = vadd.xlane.f32.xlu0 %v956_v19  ;;  %2086 = vmatprep.subr.bf16.mxu0 %v2085_v18 }
 0xb50   : > { %2088 = vmatpush3.bf16.msra.mxu0 %v2085_v18 }
 0xb5c   : > { %974 = vrot.lane.b32.xlu1 %v2791_v4, %s2508_s16 }
 0xb60   : > { %976 = vrot.lane.b32.xlu1 %v2785_v2, %s2508_s16 }
 0xb65   : > { %972 = vrot.lane.b32.xlu0 %v2782_v1, %s2508_s16 }
 0xb69   : > { %978 = vrot.lane.b32.xlu0 %v2799_v6, %s2508_s16  ;;  %s2522_s16 = smov 94  }
 0xbd8   : > { %v958_v20 = vpop.xlane.xlu1 %957 }
 0xbd9   : > { %962 = vst.msk [vmem:[#allocation2] sm:$0xff] %vm961_vm6, %v958_v20  ;;  %v306_v20 = vld [vmem:[#allocation6 + $0x60] sm:$0xff] }
 0xbdc   : > { %v960_v21 = vpop.xlane.xlu0 %959  ;;  %v975_v22 = vpop.permute.xlu1 %974 }
 0xbdd   : > { %963 = vst.msk [vmem:[#allocation2 + $0x8] sm:$0xff] %vm961_vm6, %v960_v21  ;;  %v307_v21 = vld [vmem:[#allocation6 + $0x68] sm:$0xff]  ;;  %vm1340_vm6 = vcmask 785408  }
 0xbe0   : > { %v973_v23 = vpop.permute.xlu0 %972  ;;  %v977_v26 = vpop.permute.xlu1 %976 }
 0xbe1   : > { %v981_v24 = vsel %vm980_vm7, %v973_v23, %v975_v22  ;;  %v2089_v22 = vpack.c.bf16 %v307_v21, %v306_v20 }
 0xbe2   : > { %v985_v25 = vmul.f32 %v981_v24, %v2782_v1  ;;  %v308_v24 = vld [vmem:[#allocation6 + $0x70] sm:$0xff] }
 0xbe3   : > { %2090 = vmatprep.subr.bf16.mxu0 %v2089_v22 }
 0xbe4   : > { %987 = vadd.xlane.f32.xlu1 %v985_v25  ;;  %v979_v27 = vpop.permute.xlu0 %978  ;;  %v309_v25 = vld [vmem:[#allocation6 + $0x78] sm:$0xff]  ;;  %2092 = vmatpush3.bf16.msra.mxu0 %v2089_v22 }
 0xbe5   : > { %v982_v28 = vsel %vm980_vm7, %v977_v26, %v979_v27  ;;  %v2093_v26 = vpack.c.bf16 %v309_v25, %v308_v24  ;;  %vm1370_vm7 = vcmask 777216  }
 0xbe6   : > { %v986_v29 = vmul.f32 %v982_v28, %v2785_v2 }
 0xbe7   : > { %2094 = vmatprep.subr.bf16.mxu0 %v2093_v26 }
 0xbe8   : > { %989 = vadd.xlane.f32.xlu0 %v986_v29  ;;  %2096 = vmatpush3.bf16.msra.mxu0 %v2093_v26  ;;  %v3080_v29 = vld [vmem:[%s2767_s8] sm:$0xff] }
 0xbeb   : > { %1993 = vmatmul.mubr.f32.vlgmr.msra.gmra.mrb[0].mxu0 %v2795_v5 }
 0xbf5   : > { %1004 = vrot.lane.b32.xlu1 %v2791_v4, %s2509_s9 }
 0xbf9   : > { %1006 = vrot.lane.b32.xlu1 %v2785_v2, %s2509_s9 }
 0xbfe   : > { %1002 = vrot.lane.b32.xlu0 %v2782_v1, %s2509_s9 }
 0xc02   : > { %1008 = vrot.lane.b32.xlu0 %v2799_v6, %s2509_s9  ;;  %s2523_s9 = smov 93  }
 0xc71   : > { %v988_v30 = vpop.xlane.xlu1 %987 }
 0xc72   : > { %992 = vst.msk [vmem:[#allocation2] sm:$0xff] %vm991_vm8, %v988_v30 }
 0xc75   : > { %v990_v31 = vpop.xlane.xlu0 %989  ;;  %v1005_v32 = vpop.permute.xlu1 %1004 }
 0xc76   : > { %993 = vst.msk [vmem:[#allocation2 + $0x8] sm:$0xff] %vm991_vm8, %v990_v31  ;;  %vm1400_vm8 = vcmask 769024  }
 0xc79   : > { %v1003_v33 = vpop.permute.xlu0 %1002  ;;  %v1007_v35 = vpop.permute.xlu1 %1006 }
 0xc7a   : > { %v1011_v34 = vsel %vm1010_vm9, %v1003_v33, %v1005_v32  ;;  %v3091_v33 = vld [vmem:[%s2767_s8 + $0x10] sm:$0xff]  ;;  %s1896_s8 = sshll.u32 %s2763_s29, 4 }
 0xc7b   : > { %v1015_v4 = vmul.f32 %v1011_v34, %v2782_v1 }
 0xc7d   : > { %1017 = vadd.xlane.f32.xlu1 %v1015_v4  ;;  %v1009_v36 = vpop.permute.xlu0 %1008 }
 0xc7e   : > { %v1012_v37 = vsel %vm1010_vm9, %v1007_v35, %v1009_v36  ;;  %vm1081_vm9 = vcmask 195768  }
 0xc7f   : > { %v1016_v6 = vmul.f32 %v1012_v37, %v2785_v2 }
 0xc81   : > { %1019 = vadd.xlane.f32.xlu0 %v1016_v6 }
 0xc8e   : > { %1034 = vrot.lane.b32.xlu1 %v2933_v38, %s2510_s23 }
 0xc92   : > { %1036 = vrot.lane.b32.xlu1 %v2937_v39, %s2510_s23 }
 0xc97   : > { %1032 = vrot.lane.b32.xlu0 %v2941_v40, %s2510_s23 }
 0xc9b   : > { %1038 = vrot.lane.b32.xlu0 %v2945_v41, %s2510_s23  ;;  %s2524_s23 = smov 92  }
 0xc9f   : > { %1062 = vrot.lane.b32.xlu0 %v2941_v40, %s2511_s27 }
 0xca3   : > { %1064 = vrot.lane.b32.xlu0 %v2933_v38, %s2511_s27 }
 0xca7   : > { %1066 = vrot.lane.b32.xlu0 %v2937_v39, %s2511_s27 }
 0xcab   : > { %1068 = vrot.lane.b32.xlu0 %v2945_v41, %s2511_s27  ;;  %s2525_s27 = smov 91  }
 0xcaf   : > { %1092 = vrot.lane.b32.xlu0 %v2941_v40, %s2512_s12 }
 0xcb3   : > { %1094 = vrot.lane.b32.xlu0 %v2933_v38, %s2512_s12 }
 0xcb7   : > { %1096 = vrot.lane.b32.xlu0 %v2937_v39, %s2512_s12 }
 0xcbb   : > { %1098 = vrot.lane.b32.xlu0 %v2945_v41, %s2512_s12  ;;  %s2526_s12 = smov 90  }
 0xcbf   : > { %1122 = vrot.lane.b32.xlu0 %v2941_v40, %s2513_s6 }
 0xcc3   : > { %1126 = vrot.lane.b32.xlu0 %v2937_v39, %s2513_s6 }
 0xcc7   : > { %1128 = vrot.lane.b32.xlu0 %v2945_v41, %s2513_s6 }
 0xccb   : > { %1152 = vrot.lane.b32.xlu0 %v2941_v40, %s2514_s28 }
 0xccf   : > { %1154 = vrot.lane.b32.xlu0 %v2933_v38, %s2514_s28 }
 0xcd3   : > { %1158 = vrot.lane.b32.xlu0 %v2945_v41, %s2514_s28 }
 0xcd7   : > { %1184 = vrot.lane.b32.xlu0 %v2933_v38, %s2515_s17 }
 0xcdb   : > { %1188 = vrot.lane.b32.xlu0 %v2945_v41, %s2515_s17 }
 0xcdf   : > { %1214 = vrot.lane.b32.xlu0 %v2933_v38, %s2516_s10 }
 0xce3   : > { %1218 = vrot.lane.b32.xlu0 %v2945_v41, %s2516_s10 }
 0xce7   : > { %1244 = vrot.lane.b32.xlu0 %v2933_v38, %s2517_s24 }
 0xceb   : > { %1248 = vrot.lane.b32.xlu0 %v2945_v41, %s2517_s24 }
 0xcef   : > { %1274 = vrot.lane.b32.xlu0 %v2933_v38, %s2518_s26 }
 0xcf3   : > { %1278 = vrot.lane.b32.xlu0 %v2945_v41, %s2518_s26 }
 0xcf7   : > { %1304 = vrot.lane.b32.xlu0 %v2933_v38, %s2519_s11 }
 0xcfb   : > { %1308 = vrot.lane.b32.xlu0 %v2945_v41, %s2519_s11 }
 0xcff   : > { %1334 = vrot.lane.b32.xlu0 %v2933_v38, %s2520_s13 }
 0xd03   : > { %1338 = vrot.lane.b32.xlu0 %v2945_v41, %s2520_s13 }
 0xd07   : > { %1364 = vrot.lane.b32.xlu0 %v2933_v38, %s2521_s15 }
 0xd0a   : > { %v1018_v2 = vpop.xlane.xlu1 %1017 }
 0xd0b   : > { %1022 = vst.msk [vmem:[#allocation2] sm:$0xff] %vm1021_vm10, %v1018_v2  ;;  %1368 = vrot.lane.b32.xlu0 %v2945_v41, %s2521_s15 }
 0xd0e   : > { %v1020_v42 = vpop.xlane.xlu0 %1019  ;;  %v1035_v43 = vpop.permute.xlu1 %1034 }
 0xd0f   : > { %1023 = vst.msk [vmem:[#allocation2 + $0x8] sm:$0xff] %vm1021_vm10, %v1020_v42  ;;  %1394 = vrot.lane.b32.xlu0 %v2933_v38, %s2522_s16  ;;  %vm1430_vm10 = vcmask 760832  }
 0xd12   : > { %v1033_v44 = vpop.permute.xlu0 %1032 }
 0xd13   : > { %v1041_v45 = vsel %vm1040_vm11, %v1033_v44, %v1035_v43  ;;  %1398 = vrot.lane.b32.xlu0 %v2945_v41, %s2522_s16 }
 0xd14   : > { %v1045_v46 = vmul.f32 %v1041_v45, %v2782_v1 }
 0xd16   : > { %1047 = vadd.xlane.f32.xlu1 %v1045_v46  ;;  %v3002_v47 = vpop.permute.xlu0 %1038 }
 0xd17   : > { %1424 = vrot.lane.b32.xlu0 %v2933_v38, %s2523_s9 }
 0xd1a   : > { %v3006_v48 = vpop.permute.xlu0 %1062 }
 0xd1b   : > { %1428 = vrot.lane.b32.xlu0 %v2945_v41, %s2523_s9 }
 0xd1e   : > { %v3010_v49 = vpop.permute.xlu0 %1064 }
 0xd1f   : > { %1454 = vrot.lane.b32.xlu0 %v2933_v38, %s2524_s23  ;;  %v1071_v28 = vsel %vm1070_vm13, %v3006_v48, %v3010_v49  ;;  %v1037_v48 = vpop.permute.xlu1 %1036 }
 0xd20   : > { %v1075_v30 = vmul.f32 %v3080_v29, %v1071_v28  ;;  %v1042_v62 = vsel %vm1040_vm11, %v1037_v48, %v3002_v47  ;;  %vm1111_vm11 = vcmask 203968  }
 0xd21   : > { %v1046_v0 = vmul.f32 %v3091_v33, %v1042_v62 }
 0xd22   : > { %v3014_v50 = vpop.permute.xlu0 %1066 }
 0xd23   : > { %1458 = vrot.lane.b32.xlu0 %v2945_v41, %s2524_s23 }
 0xd26   : > { %v3018_v1 = vpop.permute.xlu0 %1068 }
 0xd27   : > { %1124 = vrot.lane.b32.xlu1 %v2933_v38, %s2513_s6  ;;  %1484 = vrot.lane.b32.xlu0 %v2933_v38, %s2525_s27  ;;  %s2527_s6 = smov 89   ;;  %v1072_v32 = vsel %vm1070_vm13, %v3014_v50, %v3018_v1  ;;  %vm1490_vm13 = vcmask 744448  }
 0xd28   : > { %v1076_v34 = vmul.f32 %v3091_v33, %v1072_v32 }
 0xd2a   : > { %v3024_v51 = vpop.permute.xlu0 %1092 }
 0xd2b   : > { %1156 = vrot.lane.b32.xlu1 %v2937_v39, %s2514_s28  ;;  %1488 = vrot.lane.b32.xlu0 %v2945_v41, %s2525_s27  ;;  %s287_s28 = scalar_lea.vmem [#allocation11], %s1896_s8 }
 0xd2e   : > { %v3030_v52 = vpop.permute.xlu0 %1094 }
 0xd2f   : > { %1182 = vrot.lane.b32.xlu1 %v2941_v40, %s2515_s17  ;;  %1514 = vrot.lane.b32.xlu0 %v2933_v38, %s2526_s12  ;;  %v1101_v35 = vsel %vm1100_vm14, %v3024_v51, %v3030_v52 }
 0xd30   : > { %v1105_v36 = vmul.f32 %v3080_v29, %v1101_v35 }
 0xd32   : > { %v3036_v53 = vpop.permute.xlu0 %1096 }
 0xd33   : > { %1186 = vrot.lane.b32.xlu1 %v2937_v39, %s2515_s17  ;;  %1518 = vrot.lane.b32.xlu0 %v2945_v41, %s2526_s12  ;;  %s1779_s17 = sshll.u32 %s287_s28, 4  ;;  %s3278_s17 = int_to_ptr.vmem [resolvable:$true] %s1779_s17 }
 0xd36   : > { %v3042_v57 = vpop.permute.xlu0 %1098 }
 0xd37   : > { %1212 = vrot.lane.b32.xlu1 %v2941_v40, %s2516_s10  ;;  %1544 = vrot.lane.b32.xlu0 %v2933_v38, %s2527_s6 }
 0xd3a   : > { %v3048_v61 = vpop.permute.xlu0 %1122 }
 0xd3b   : > { %1216 = vrot.lane.b32.xlu1 %v2937_v39, %s2516_s10  ;;  %1548 = vrot.lane.b32.xlu0 %v2945_v41, %s2527_s6 }
 0xd3e   : > { %v1127_v3 = vpop.permute.xlu0 %1126 }
 0xd3f   : > { %1242 = vrot.lane.b32.xlu1 %v2941_v40, %s2517_s24 }
 0xd42   : > { %v1129_v10 = vpop.permute.xlu0 %1128 }
 0xd43   : > { %1246 = vrot.lane.b32.xlu1 %v2937_v39, %s2517_s24  ;;  %v3059_v11 = vsel %vm1130_vm12, %v1127_v3, %v1129_v10  ;;  %v1102_v3 = vsel %vm1100_vm14, %v3036_v53, %v3042_v57  ;;  %vm1520_vm14 = vcmask 736256  }
 0xd44   : > { %v1106_v10 = vmul.f32 %v3091_v33, %v1102_v3  ;;  %v1136_v13 = vmul.f32 %v3091_v33, %v3059_v11 }
 0xd46   : > { %v3061_v15 = vpop.permute.xlu0 %1152 }
 0xd47   : > { %1272 = vrot.lane.b32.xlu1 %v2941_v40, %s2518_s26 }
 0xd4a   : > { %v3065_v19 = vpop.permute.xlu0 %1154 }
 0xd4b   : > { %1276 = vrot.lane.b32.xlu1 %v2937_v39, %s2518_s26  ;;  %v1161_v52 = vsel %vm1160_vm0, %v3061_v15, %v3065_v19  ;;  %s1905_s26 = sshll.u32 %s2582_s22, 8  ;;  %s2528_s22 = smov [#allocation11]  }
 0xd4c   : > { %v1165_v56 = vmul.f32 %v3080_v29, %v1161_v52 }
 0xd4e   : > { %v3069_v23 = vpop.permute.xlu0 %1158 }
 0xd4f   : > { %1302 = vrot.lane.b32.xlu1 %v2941_v40, %s2519_s11 }
 0xd52   : > { %v3073_v27 = vpop.permute.xlu0 %1184 }
 0xd53   : > { %1306 = vrot.lane.b32.xlu1 %v2937_v39, %s2519_s11 }
 0xd56   : > { %v3083_v31 = vpop.permute.xlu0 %1188 }
 0xd57   : > { %1332 = vrot.lane.b32.xlu1 %v2941_v40, %s2520_s13 }
 0xd5a   : > { %1077 = vadd.xlane.f32.xlu0 %v1075_v30  ;;  %v1215_v4 = vpop.permute.xlu0 %1214 }
 0xd5b   : > { %1336 = vrot.lane.b32.xlu1 %v2937_v39, %s2520_s13 }
 0xd5e   : > { %1079 = vadd.xlane.f32.xlu0 %v1076_v34  ;;  %v3100_v37 = vpop.permute.xlu0 %1218 }
 0xd5f   : > { %1362 = vrot.lane.b32.xlu1 %v2941_v40, %s2521_s15 }
 0xd62   : > { %1107 = vadd.xlane.f32.xlu0 %v1105_v36  ;;  %v3106_v5 = vpop.permute.xlu0 %1244 }
 0xd63   : > { %1366 = vrot.lane.b32.xlu1 %v2937_v39, %s2521_s15  ;;  %s3283_s15 = scalar_lea.hbm %s3332_s5, %s1905_s26 }
 0xd66   : > { %v3110_v6 = vpop.permute.xlu0 %1248 }
 0xd67   : > { %1392 = vrot.lane.b32.xlu1 %v2941_v40, %s2522_s16 }
 0xd6a   : > { %v3116_v38 = vpop.permute.xlu0 %1274 }
 0xd6b   : > { %1396 = vrot.lane.b32.xlu1 %v2937_v39, %s2522_s16  ;;  %s1766_s16 = scalar_lea.sflag [#allocation5], %s2763_s29 }
 0xd6e   : > { %v3120_v41 = vpop.permute.xlu0 %1278 }
 0xd6f   : > { %1422 = vrot.lane.b32.xlu1 %v2941_v40, %s2523_s9 }
 0xd72   : > { %v3126_v2 = vpop.permute.xlu0 %1304 }
 0xd73   : > { %1426 = vrot.lane.b32.xlu1 %v2937_v39, %s2523_s9  ;;  %s2404_s9 = scalar_lea.vmem %s3278_s17, 256 }
 0xd74   : > { %p2405_p10 = scmp.ne.s32.totalorder %s3278_s17, %s2404_s9 }
 0xd76   : > { %v3130_v42 = vpop.permute.xlu0 %1308  ;;  %p2406_p3 = pnand %p2405_p10, %p2715_p5 }
 0xd77   : > { %1452 = vrot.lane.b32.xlu1 %v2941_v40, %s2524_s23 }
 0xd78   : > { %p2407_p7 = pneg %p2406_p3 }
 0xd7a   : > { %v3136_v43 = vpop.permute.xlu0 %1334 }
 0xd7b   : > { %1456 = vrot.lane.b32.xlu1 %v2937_v39, %s2524_s23  ;;  %s2408_s23 = sshll.u32 %s2528_s22, 4  ;;  %s2409_s23 = int_to_ptr.vmem [resolvable:$false] %s2408_s23 }
 0xd7c   : > { %p2411_p12 = scmp.lt.s32.totalorder %s3278_s17, %s2409_s23 }
 0xd7e   : > { %v3140_v44 = vpop.permute.xlu0 %1338 }
 0xd7f   : > { %1482 = vrot.lane.b32.xlu1 %v2941_v40, %s2525_s27 }
 0xd82   : > { %v3146_v45 = vpop.permute.xlu0 %1364 }
 0xd83   : > { %1486 = vrot.lane.b32.xlu1 %v2937_v39, %s2525_s27  ;;  %s2410_s27 = scalar_lea.vmem %s2409_s23, 512 }
 0xd84   : > { %p2412_p1 = scmp.lt.s32.totalorder %s2410_s27, %s2404_s9 }
 0xd86   : > { %v3148_v46 = vpop.permute.xlu0 %1368  ;;  %p2413_p2 = por %p2412_p1, %p2411_p12 }
 0xd87   : > { %1512 = vrot.lane.b32.xlu1 %v2941_v40, %s2526_s12 }
 0xd88   : > { %p2414_p4 = pnand %p2413_p2, %p2407_p7 }
 0xd8a   : > { %v3150_v49 = vpop.permute.xlu0 %1394 }
 0xd8b   : > { %1516 = vrot.lane.b32.xlu1 %v2937_v39, %s2526_s12 }
 0xd8e   : > { %v3153_v1 = vpop.permute.xlu0 %1398 }
 0xd8f   : > { %1542 = vrot.lane.b32.xlu1 %v2941_v40, %s2527_s6 }
 0xd92   : > { %v3161_v55 = vpop.permute.xlu0 %1424 }
 0xd93   : > { %1546 = vrot.lane.b32.xlu1 %v2937_v39, %s2527_s6 }
 0xda3   : > { %v1048_v50 = vpop.xlane.xlu1 %1047 }
 0xda4   : > { %1052 = vst.msk [vmem:[#allocation2] sm:$0xff] %vm1051_vm15, %v1048_v50 }
 0xda7   : > { %v1125_v51 = vpop.permute.xlu1 %1124 }
 0xda8   : > { %v1131_v40 = vsel %vm1130_vm12, %v3048_v61, %v1125_v51  ;;  %v3167_v61 = vpop.permute.xlu0 %1428  ;;  %vm1460_vm12 = vcmask 752640  }
 0xda9   : > { %v1135_v39 = vmul.f32 %v3080_v29, %v1131_v40 }
 0xdab   : > { %v1157_v54 = vpop.permute.xlu1 %1156  ;;  %1137 = vadd.xlane.f32.xlu0 %v1135_v39 }
 0xdac   : > { %v3175_v8 = vpop.permute.xlu0 %1454  ;;  %v1162_v53 = vsel %vm1160_vm0, %v1157_v54, %v3069_v23  ;;  %vm1550_vm0 = vcmask 728064  }
 0xdad   : > { %v1166_v16 = vmul.f32 %v3091_v33, %v1162_v53 }
 0xdaf   : > { %v1183_v58 = vpop.permute.xlu1 %1182  ;;  %1167 = vadd.xlane.f32.xlu0 %v1165_v56 }
 0xdb0   : > { %v1191_v59 = vsel %vm1190_vm1, %v1183_v58, %v3073_v27  ;;  %v3182_v14 = vpop.permute.xlu0 %1458 }
 0xdb1   : > { %v1195_v60 = vmul.f32 %v3080_v29, %v1191_v59 }
 0xdb3   : > { %v1187_v63 = vpop.permute.xlu1 %1186  ;;  %1197 = vadd.xlane.f32.xlu0 %v1195_v60 }
 0xdb4   : > { %v1192_v18 = vsel %vm1190_vm1, %v1187_v63, %v3083_v31  ;;  %v3192_v11 = vpop.permute.xlu0 %1484  ;;  %vm1141_vm1 = vcmask 212168  }
 0xdb5   : > { %v1196_v20 = vmul.f32 %v3091_v33, %v1192_v18 }
 0xdb7   : > { %v1213_v7 = vpop.permute.xlu1 %1212  ;;  %1049 = vadd.xlane.f32.xlu1 %v1046_v0 }
 0xdb8   : > { %v1221_v9 = vsel %vm1220_vm2, %v1213_v7, %v1215_v4  ;;  %v3200_v26 = vpop.permute.xlu0 %1488 }
 0xdb9   : > { %v1225_v12 = vmul.f32 %v3080_v29, %v1221_v9 }
 0xdbb   : > { %v1217_v47 = vpop.permute.xlu1 %1216  ;;  %1109 = vadd.xlane.f32.xlu1 %v1106_v10  ;;  %1227 = vadd.xlane.f32.xlu0 %v1225_v12 }
 0xdbc   : > { %v1222_v21 = vsel %vm1220_vm2, %v1217_v47, %v3100_v37  ;;  %v3206_v34 = vpop.permute.xlu0 %1514  ;;  %vm1171_vm2 = vcmask 220368  }
 0xdbd   : > { %v1226_v24 = vmul.f32 %v3091_v33, %v1222_v21 }
 0xdbf   : > { %v1243_v57 = vpop.permute.xlu1 %1242  ;;  %1139 = vadd.xlane.f32.xlu1 %v1136_v13 }
 0xdc0   : > { %v1251_v15 = vsel %vm1250_vm3, %v1243_v57, %v3106_v5 }
 0xdc1   : > { %v1255_v17 = vmul.f32 %v3080_v29, %v1251_v15 }
 0xdc3   : > { %v1247_v19 = vpop.permute.xlu1 %1246  ;;  %1169 = vadd.xlane.f32.xlu1 %v1166_v16  ;;  %1257 = vadd.xlane.f32.xlu0 %v1255_v17 }
 0xdc4   : > { %v1252_v27 = vsel %vm1250_vm3, %v1247_v19, %v3110_v6  ;;  %vm1201_vm3 = vcmask 228568  }
 0xdc5   : > { %v1256_v30 = vmul.f32 %v3091_v33, %v1252_v27  ;;  %v1571_v27 = vld [vmem:[#allocation8 + $0x8] sm:$0xff] }
 0xdc7   : > { %v1273_v22 = vpop.permute.xlu1 %1272  ;;  %1199 = vadd.xlane.f32.xlu1 %v1196_v20 }
 0xdc8   : > { %v1281_v23 = vsel %vm1280_vm4, %v1273_v22, %v3116_v38  ;;  %v3213_v38 = vpop.permute.xlu0 %1518 }
 0xdc9   : > { %v1285_v25 = vmul.f32 %v3080_v29, %v1281_v23 }
 0xdcb   : > { %v1277_v28 = vpop.permute.xlu1 %1276  ;;  %1229 = vadd.xlane.f32.xlu1 %v1226_v24  ;;  %1287 = vadd.xlane.f32.xlu0 %v1285_v25  ;;  %v1570_v25 = vld [vmem:[#allocation8] sm:$0xff] }
 0xdcc   : > { %v1282_v31 = vsel %vm1280_vm4, %v1277_v28, %v3120_v41  ;;  %v3217_v51 = vpop.permute.xlu0 %1544  ;;  %vm1231_vm4 = vcmask 236768  }
 0xdcd   : > { %v1286_v35 = vmul.f32 %v3091_v33, %v1282_v31 }
 0xdcf   : > { %v1303_v32 = vpop.permute.xlu1 %1302  ;;  %1259 = vadd.xlane.f32.xlu1 %v1256_v30 }
 0xdd0   : > { %v1311_v4 = vsel %vm1310_vm5, %v1303_v32, %v3126_v2  ;;  %v3223_v56 = vpop.permute.xlu0 %1548  ;;  %v1572_v32 = vld [vmem:[#allocation8 + $0x10] sm:$0xff] }
 0xdd1   : > { %v1315_v36 = vmul.f32 %v3080_v29, %v1311_v4 }
 0xdd3   : > { %v1307_v37 = vpop.permute.xlu1 %1306  ;;  %1289 = vadd.xlane.f32.xlu1 %v1286_v35  ;;  %1317 = vadd.xlane.f32.xlu0 %v1315_v36 }
 0xdd4   : > { %v1312_v5 = vsel %vm1310_vm5, %v1307_v37, %v3130_v42  ;;  %vm1261_vm5 = vcmask 244968  }
 0xdd5   : > { %v1316_v6 = vmul.f32 %v3091_v33, %v1312_v5  ;;  %v1574_v5 = vld [vmem:[#allocation8 + $0x20] sm:$0xff] }
 0xdd7   : > { %v1333_v41 = vpop.permute.xlu1 %1332  ;;  %1319 = vadd.xlane.f32.xlu1 %v1316_v6  ;;  %v1575_v6 = vld [vmem:[#allocation8 + $0x28] sm:$0xff] }
 0xdd8   : > { %v1341_v48 = vsel %vm1340_vm6, %v1333_v41, %v3136_v43  ;;  %v1577_v41 = vld [vmem:[#allocation8 + $0x38] sm:$0xff] }
 0xdd9   : > { %v1345_v2 = vmul.f32 %v3080_v29, %v1341_v48 }
 0xddb   : > { %v1337_v50 = vpop.permute.xlu1 %1336  ;;  %1347 = vadd.xlane.f32.xlu0 %v1345_v2  ;;  %v1578_v2 = vld [vmem:[#allocation8 + $0x40] sm:$0xff] }
 0xddc   : > { %v1342_v40 = vsel %vm1340_vm6, %v1337_v50, %v3140_v44  ;;  %v1579_v50 = vld [vmem:[#allocation8 + $0x48] sm:$0xff]  ;;  %vm1321_vm6 = vcmask 261368  }
 0xddd   : > { %v1346_v39 = vmul.f32 %v3091_v33, %v1342_v40  ;;  %v1580_v40 = vld [vmem:[#allocation8 + $0x50] sm:$0xff] }
 0xddf   : > { %v1363_v42 = vpop.permute.xlu1 %1362  ;;  %1349 = vadd.xlane.f32.xlu1 %v1346_v39 }
 0xde0   : > { %v1371_v52 = vsel %vm1370_vm7, %v1363_v42, %v3146_v45  ;;  %v1582_v42 = vld [vmem:[#allocation8 + $0x60] sm:$0xff] }
 0xde1   : > { %v1375_v54 = vmul.f32 %v3080_v29, %v1371_v52  ;;  %v1583_v52 = vld [vmem:[#allocation8 + $0x68] sm:$0xff] }
 0xde3   : > { %v1367_v43 = vpop.permute.xlu1 %1366  ;;  %1377 = vadd.xlane.f32.xlu0 %v1375_v54  ;;  %v2121_v54 = vpack.c.bf16 %v1583_v52, %v1582_v42  ;;  %v1677_v42 = vld [vmem:[#allocation9 + $0x60] sm:$0xff]  ;;  %v1678_v52 = vld [vmem:[#allocation9 + $0x68] sm:$0xff] }
 0xde4   : > { %v1372_v58 = vsel %vm1370_vm7, %v1367_v43, %v3148_v46  ;;  %v1584_v43 = vld [vmem:[#allocation8 + $0x70] sm:$0xff]  ;;  %vm1351_vm7 = vcmask 269568  }
 0xde5   : > { %v1376_v59 = vmul.f32 %v3091_v33, %v1372_v58  ;;  %v1585_v58 = vld [vmem:[#allocation8 + $0x78] sm:$0xff] }
 0xde7   : > { %v1393_v44 = vpop.permute.xlu1 %1392  ;;  %1379 = vadd.xlane.f32.xlu1 %v1376_v59  ;;  %v1078_v60 = vpop.xlane.xlu0 %1077 }
 0xde8   : > { %v1401_v62 = vsel %vm1400_vm8, %v1393_v44, %v3150_v49  ;;  %1082 = vst.msk [vmem:[#allocation2] sm:$0xff] %vm1081_vm9, %v1078_v60  ;;  %v2125_v44 = vpack.c.bf16 %v1585_v58, %v1584_v43  ;;  %v1665_v60 = vld [vmem:[#allocation9] sm:$0xff]  ;;  %v1679_v43 = vld [vmem:[#allocation9 + $0x70] sm:$0xff]  ;;  %v1680_v58 = vld [vmem:[#allocation9 + $0x78] sm:$0xff] }
 0xde9   : > { %v1405_v45 = vmul.f32 %v3080_v29, %v1401_v62  ;;  %v1666_v62 = vld [vmem:[#allocation9 + $0x8] sm:$0xff] }
 0xdeb   : > { %v1397_v63 = vpop.permute.xlu1 %1396  ;;  %1407 = vadd.xlane.f32.xlu0 %v1405_v45  ;;  %v3230_v0 = vpop.xlane.xlu0 %1079  ;;  %v1667_v45 = vld [vmem:[#allocation9 + $0x10] sm:$0xff] }
 0xdec   : > { %v1402_v3 = vsel %vm1400_vm8, %v1397_v63, %v3153_v1  ;;  %v2129_v63 = vpack.c.bf16 %v1666_v62, %v1665_v60  ;;  %vm1381_vm8 = vcmask 277768  }
 0xded   : > { %v1406_v46 = vmul.f32 %v3091_v33, %v1402_v3  ;;  %v1668_v3 = vld [vmem:[#allocation9 + $0x18] sm:$0xff] }
 0xdee   : > { %2130 = vmatprep.subr.bf16.mxu0 %v2129_v63 }
 0xdef   : > { %v1423_v7 = vpop.permute.xlu1 %1422  ;;  %1409 = vadd.xlane.f32.xlu1 %v1406_v46  ;;  %v1108_v9 = vpop.xlane.xlu0 %1107  ;;  %v2133_v46 = vpack.c.bf16 %v1668_v3, %v1667_v45  ;;  %2132 = vmatpush3.bf16.msra.mxu0 %v2129_v63 }
 0xdf0   : > { %v1431_v10 = vsel %vm1430_vm10, %v1423_v7, %v3161_v55  ;;  %1112 = vst.msk [vmem:[#allocation2] sm:$0xff] %vm1111_vm11, %v1108_v9  ;;  %v1669_v7 = vld [vmem:[#allocation9 + $0x20] sm:$0xff]  ;;  %v1670_v9 = vld [vmem:[#allocation9 + $0x28] sm:$0xff] }
 0xdf1   : > { %v1435_v49 = vmul.f32 %v3080_v29, %v1431_v10  ;;  %2134 = vmatprep.subr.bf16.mxu0 %v2133_v46  ;;  %v2137_v10 = vpack.c.bf16 %v1670_v9, %v1669_v7  ;;  %v1897_v7 = vld [vmem:[%s3331_s4] ss:$0 sm:$0xff] }
 0xdf3   : > { %v1427_v12 = vpop.permute.xlu1 %1426  ;;  %1437 = vadd.xlane.f32.xlu0 %v1435_v49  ;;  %v1671_v49 = vld [vmem:[#allocation9 + $0x30] sm:$0xff]  ;;  %2136 = vmatpush3.bf16.msra.mxu0 %v2133_v46 }
 0xdf4   : > { %v1432_v47 = vsel %vm1430_vm10, %v1427_v12, %v3167_v61  ;;  %v1672_v12 = vld [vmem:[#allocation9 + $0x38] sm:$0xff]  ;;  %2138 = vmatprep.subr.bf16.mxu0 %v2137_v10  ;;  %vm1441_vm10 = vcmask 294168  }
 0xdf5   : > { %v1436_v13 = vmul.f32 %v3091_v33, %v1432_v47 }
 0xdf7   : > { %v1453_v1 = vpop.permute.xlu1 %1452  ;;  %1439 = vadd.xlane.f32.xlu1 %v1436_v13  ;;  %v2141_v13 = vpack.c.bf16 %v1672_v12, %v1671_v49  ;;  %2140 = vmatpush3.bf16.msra.mxu0 %v2137_v10 }
 0xdf8   : > { %v1461_v53 = vsel %vm1460_vm12, %v1453_v1, %v3175_v8 }
 0xdf9   : > { %v1465_v57 = vmul.f32 %v3080_v29, %v1461_v53  ;;  %2142 = vmatprep.subr.bf16.mxu0 %v2141_v13 }
 0xdfb   : > { %v1457_v15 = vpop.permute.xlu1 %1456  ;;  %1467 = vadd.xlane.f32.xlu0 %v1465_v57  ;;  %2144 = vmatpush3.bf16.msra.mxu0 %v2141_v13 }
 0xdfc   : > { %v1462_v55 = vsel %vm1460_vm12, %v1457_v15, %v3182_v14  ;;  %vm1501_vm12 = vcmask 310568  }
 0xdfd   : > { %v1466_v16 = vmul.f32 %v3091_v33, %v1462_v55 }
 0xdff   : > { %v1483_v17 = vpop.permute.xlu1 %1482  ;;  %1469 = vadd.xlane.f32.xlu1 %v1466_v16 }
 0xe00   : > { %v1491_v61 = vsel %vm1490_vm13, %v1483_v17, %v3192_v11 }
 0xe01   : > { %v1495_v18 = vmul.f32 %v3080_v29, %v1491_v61 }
 0xe03   : > { %v1487_v19 = vpop.permute.xlu1 %1486  ;;  %1497 = vadd.xlane.f32.xlu0 %v1495_v18 }
 0xe04   : > { %v1492_v20 = vsel %vm1490_vm13, %v1487_v19, %v3200_v26  ;;  %v2097_v26 = vpack.c.bf16 %v1571_v27, %v1570_v25  ;;  %vm1531_vm13 = vcmask 318768  }
 0xe05   : > { %v1496_v8 = vmul.f32 %v3091_v33, %v1492_v20 }
 0xe06   : > { %2098 = vmatprep.subr.bf16.mxu1 %v2097_v26 }
 0xe07   : > { %v1513_v21 = vpop.permute.xlu1 %1512  ;;  %1499 = vadd.xlane.f32.xlu1 %v1496_v8  ;;  %2100 = vmatpush3.bf16.msra.mxu1 %v2097_v26 }
 0xe08   : > { %v1521_v14 = vsel %vm1520_vm14, %v1513_v21, %v3206_v34  ;;  %v1573_v34 = vld [vmem:[#allocation8 + $0x18] sm:$0xff] }
 0xe09   : > { %v1525_v22 = vmul.f32 %v3080_v29, %v1521_v14  ;;  %v2101_v35 = vpack.c.bf16 %v1573_v34, %v1572_v32 }
 0xe0b   : > { %v1517_v23 = vpop.permute.xlu1 %1516  ;;  %1527 = vadd.xlane.f32.xlu0 %v1525_v22  ;;  %2102 = vmatprep.subr.bf16.mxu1 %v2101_v35 }
 0xe0c   : > { %v1522_v24 = vsel %vm1520_vm14, %v1517_v23, %v3213_v38  ;;  %2104 = vmatpush3.bf16.msra.mxu1 %v2101_v35  ;;  %v2105_v38 = vpack.c.bf16 %v1575_v6, %v1574_v5  ;;  %vm1561_vm14 = vcmask 326968  }
 0xe0d   : > { %v1526_v11 = vmul.f32 %v3091_v33, %v1522_v24 }
 0xe0e   : > { %2106 = vmatprep.subr.bf16.mxu1 %v2105_v38 }
 0xe0f   : > { %v1543_v28 = vpop.permute.xlu1 %1542  ;;  %1529 = vadd.xlane.f32.xlu1 %v1526_v11 }
 0xe10   : > { %v1551_v30 = vsel %vm1550_vm0, %v1543_v28, %v3217_v51  ;;  %2108 = vmatpush3.bf16.msra.mxu1 %v2105_v38  ;;  %v2113_v51 = vpack.c.bf16 %v1579_v50, %v1578_v2  ;;  %v1673_v2 = vld [vmem:[#allocation9 + $0x40] sm:$0xff]  ;;  %v1674_v50 = vld [vmem:[#allocation9 + $0x48] sm:$0xff] }
 0xe11   : > { %v1555_v31 = vmul.f32 %v3080_v29, %v1551_v30  ;;  %v1576_v29 = vld [vmem:[#allocation8 + $0x30] sm:$0xff] }
 0xe12   : > { %v2109_v48 = vpack.c.bf16 %v1577_v41, %v1576_v29 }
 0xe13   : > { %v1547_v4 = vpop.permute.xlu1 %1546  ;;  %1557 = vadd.xlane.f32.xlu0 %v1555_v31 }
 0xe14   : > { %v1552_v36 = vsel %vm1550_vm0, %v1547_v4, %v3223_v56  ;;  %2110 = vmatprep.subr.bf16.mxu1 %v2109_v48  ;;  %v3255_v56 = vpop.f32.mrb[0].mxu0 }
 0xe15   : > { %v1556_v37 = vmul.f32 %v3091_v33, %v1552_v36  ;;  %2112 = vmatpush3.bf16.msra.mxu1 %v2109_v48  ;;  %v1581_v33 = vld [vmem:[#allocation8 + $0x58] sm:$0xff]  ;;  %v3257_v59 = vpop.f32.mrb[1].mxu0 }
 0xe16   : > { %2114 = vmatprep.subr.bf16.mxu1 %v2113_v51  ;;  %v2117_v39 = vpack.c.bf16 %v1581_v33, %v1580_v40  ;;  %v1675_v40 = vld [vmem:[#allocation9 + $0x50] sm:$0xff]  ;;  %v1676_v33 = vld [vmem:[#allocation9 + $0x58] sm:$0xff] }
 0xe17   : > { %1559 = vadd.xlane.f32.xlu1 %v1556_v37 }
 0xe19   : > { %2116 = vmatpush3.bf16.msra.mxu1 %v2113_v51  ;;  %v2145_v51 = vpack.c.bf16 %v1674_v50, %v1673_v2 }
 0xe1a   : > { %2118 = vmatprep.subr.bf16.mxu1 %v2117_v39 }
 0xe1b   : > { %2146 = vmatprep.subr.bf16.mxu0 %v2145_v51 }
 0xe1c   : > { %2148 = vmatpush3.bf16.msra.mxu0 %v2145_v51 }
 0xe1d   : > { %2120 = vmatpush3.bf16.msra.mxu1 %v2117_v39  ;;  %v2149_v39 = vpack.c.bf16 %v1676_v33, %v1675_v40 }
 0xe1e   : > { %2122 = vmatprep.subr.bf16.mxu1 %v2121_v54 }
 0xe1f   : > { %2150 = vmatprep.subr.bf16.mxu0 %v2149_v39 }
 0xe20   : > { %2152 = vmatpush3.bf16.msra.mxu0 %v2149_v39 }
 0xe21   : > { %2124 = vmatpush3.bf16.msra.mxu1 %v2121_v54  ;;  %v2153_v54 = vpack.c.bf16 %v1678_v52, %v1677_v42 }
 0xe22   : > { %2126 = vmatprep.subr.bf16.mxu1 %v2125_v44 }
 0xe23   : > { %2154 = vmatprep.subr.bf16.mxu0 %v2153_v54 }
 0xe24   : > { %2156 = vmatpush3.bf16.msra.mxu0 %v2153_v54 }
 0xe25   : > { %2128 = vmatpush3.bf16.msra.mxu1 %v2125_v44 }
 0xe38   : > { %v1138_v47 = vpop.xlane.xlu0 %1137 }
 0xe39   : > { %1142 = vst.msk [vmem:[#allocation2] sm:$0xff] %vm1141_vm1, %v1138_v47 }
 0xe3c   : > { %v1168_v1 = vpop.xlane.xlu0 %1167 }
 0xe3d   : > { %1172 = vst.msk [vmem:[#allocation2] sm:$0xff] %vm1171_vm2, %v1168_v1 }
 0xe40   : > { %v1198_v53 = vpop.xlane.xlu0 %1197 }
 0xe41   : > { %1202 = vst.msk [vmem:[#allocation2] sm:$0xff] %vm1201_vm3, %v1198_v53 }
 0xe44   : > { %v1050_v57 = vpop.xlane.xlu1 %1049 }
 0xe45   : > { %1053 = vst.msk [vmem:[#allocation2 + $0x8] sm:$0xff] %vm1051_vm15, %v1050_v57  ;;  %vm1291_vm15 = vcmask 253168  }
 0xe46   : > { %1083 = vst.msk [vmem:[#allocation2 + $0x8] sm:$0xff] %vm1081_vm9, %v3230_v0  ;;  %vm1411_vm9 = vcmask 285968  }
 0xe48   : > { %v1110_v15 = vpop.xlane.xlu1 %1109  ;;  %v1228_v55 = vpop.xlane.xlu0 %1227 }
 0xe49   : > { %1113 = vst.msk [vmem:[#allocation2 + $0x8] sm:$0xff] %vm1111_vm11, %v1110_v15  ;;  %vm1471_vm11 = vcmask 302368  }
 0xe4a   : > { %1232 = vst.msk [vmem:[#allocation2] sm:$0xff] %vm1231_vm4, %v1228_v55 }
 0xe4c   : > { %v1140_v16 = vpop.xlane.xlu1 %1139 }
 0xe4d   : > { %1143 = vst.msk [vmem:[#allocation2 + $0x8] sm:$0xff] %vm1141_vm1, %v1140_v16 }
 0xe50   : > { %v1170_v17 = vpop.xlane.xlu1 %1169  ;;  %v1258_v61 = vpop.xlane.xlu0 %1257 }
 0xe51   : > { %1173 = vst.msk [vmem:[#allocation2 + $0x8] sm:$0xff] %vm1171_vm2, %v1170_v17 }
 0xe52   : > { %1262 = vst.msk [vmem:[#allocation2] sm:$0xff] %vm1261_vm5, %v1258_v61 }
 0xe54   : > { %v1200_v18 = vpop.xlane.xlu1 %1199 }
 0xe55   : > { %1203 = vst.msk [vmem:[#allocation2 + $0x8] sm:$0xff] %vm1201_vm3, %v1200_v18 }
 0xe58   : > { %v1230_v0 = vpop.xlane.xlu1 %1229  ;;  %v1288_v19 = vpop.xlane.xlu0 %1287 }
 0xe59   : > { %1233 = vst.msk [vmem:[#allocation2 + $0x8] sm:$0xff] %vm1231_vm4, %v1230_v0 }
 0xe5a   : > { %1292 = vst.msk [vmem:[#allocation2] sm:$0xff] %vm1291_vm15, %v1288_v19 }
 0xe5c   : > { %v1260_v20 = vpop.xlane.xlu1 %1259 }
 0xe5d   : > { %1263 = vst.msk [vmem:[#allocation2 + $0x8] sm:$0xff] %vm1261_vm5, %v1260_v20 }
 0xe60   : > { %v1290_v8 = vpop.xlane.xlu1 %1289  ;;  %v1318_v21 = vpop.xlane.xlu0 %1317 }
 0xe61   : > { %1293 = vst.msk [vmem:[#allocation2 + $0x8] sm:$0xff] %vm1291_vm15, %v1290_v8 }
 0xe62   : > { %1322 = vst.msk [vmem:[#allocation2] sm:$0xff] %vm1321_vm6, %v1318_v21 }
 0xe64   : > { %v1320_v14 = vpop.xlane.xlu1 %1319 }
 0xe65   : > { %1323 = vst.msk [vmem:[#allocation2 + $0x8] sm:$0xff] %vm1321_vm6, %v1320_v14 }
 0xe68   : > { %v1348_v22 = vpop.xlane.xlu0 %1347 }
 0xe69   : > { %1352 = vst.msk [vmem:[#allocation2] sm:$0xff] %vm1351_vm7, %v1348_v22 }
 0xe6c   : > { %v1350_v23 = vpop.xlane.xlu1 %1349 }
 0xe6d   : > { %1353 = vst.msk [vmem:[#allocation2 + $0x8] sm:$0xff] %vm1351_vm7, %v1350_v23 }
 0xe70   : > { %v1378_v24 = vpop.xlane.xlu0 %1377 }
 0xe71   : > { %1382 = vst.msk [vmem:[#allocation2] sm:$0xff] %vm1381_vm8, %v1378_v24 }
 0xe74   : > { %v1380_v11 = vpop.xlane.xlu1 %1379 }
 0xe75   : > { %1383 = vst.msk [vmem:[#allocation2 + $0x8] sm:$0xff] %vm1381_vm8, %v1380_v11 }
 0xe78   : > { %v1408_v25 = vpop.xlane.xlu0 %1407 }
 0xe79   : > { %1412 = vst.msk [vmem:[#allocation2] sm:$0xff] %vm1411_vm9, %v1408_v25 }
 0xe7c   : > { %v1410_v27 = vpop.xlane.xlu1 %1409 }
 0xe7d   : > { %1413 = vst.msk [vmem:[#allocation2 + $0x8] sm:$0xff] %vm1411_vm9, %v1410_v27 }
 0xe80   : > { %v1438_v28 = vpop.xlane.xlu0 %1437 }
 0xe81   : > { %1442 = vst.msk [vmem:[#allocation2] sm:$0xff] %vm1441_vm10, %v1438_v28 }
 0xe84   : > { %v1440_v26 = vpop.xlane.xlu1 %1439 }
 0xe85   : > { %1443 = vst.msk [vmem:[#allocation2 + $0x8] sm:$0xff] %vm1441_vm10, %v1440_v26 }
 0xe88   : > { %v1468_v30 = vpop.xlane.xlu0 %1467 }
 0xe89   : > { %1472 = vst.msk [vmem:[#allocation2] sm:$0xff] %vm1471_vm11, %v1468_v30 }
 0xe8c   : > { %v1470_v31 = vpop.xlane.xlu1 %1469 }
 0xe8d   : > { %1473 = vst.msk [vmem:[#allocation2 + $0x8] sm:$0xff] %vm1471_vm11, %v1470_v31 }
 0xe90   : > { %v1498_v32 = vpop.xlane.xlu0 %1497 }
 0xe91   : > { %1502 = vst.msk [vmem:[#allocation2] sm:$0xff] %vm1501_vm12, %v1498_v32 }
 0xe94   : > { %v1500_v34 = vpop.xlane.xlu1 %1499 }
 0xe95   : > { %1503 = vst.msk [vmem:[#allocation2 + $0x8] sm:$0xff] %vm1501_vm12, %v1500_v34 }
 0xe98   : > { %v1528_v4 = vpop.xlane.xlu0 %1527 }
 0xe99   : > { %1532 = vst.msk [vmem:[#allocation2] sm:$0xff] %vm1531_vm13, %v1528_v4 }
 0xe9c   : > { %v1530_v35 = vpop.xlane.xlu1 %1529 }
 0xe9d   : > { %1533 = vst.msk [vmem:[#allocation2 + $0x8] sm:$0xff] %vm1531_vm13, %v1530_v35 }
 0xea0   : > { %v1558_v36 = vpop.xlane.xlu0 %1557 }
 0xea1   : > { %1562 = vst.msk [vmem:[#allocation2] sm:$0xff] %vm1561_vm14, %v1558_v36 }
 0xea4   : > { %v1560_v37 = vpop.xlane.xlu1 %1559 }
 0xea5   : > { %1563 = vst.msk [vmem:[#allocation2 + $0x8] sm:$0xff] %vm1561_vm14, %v1560_v37 }
 0xea8   : > { %v1564_v5 = vld [vmem:[#allocation2] sm:$0xff] }
 0xea9   : > { %v1566_v6 = vmul.f32 2.0, %v1564_v5 }
 0xeab   : > { %v1568_v38 = vsub.f32 %v3257_v59, %v1566_v6  ;;  %v2157_v59 = vpack.c.bf16 %v1680_v58, %v1679_v43 }
 0xeac   : > { %v1565_v29 = vld [vmem:[#allocation2 + $0x8] sm:$0xff] }
 0xead   : > { %v1567_v41 = vmul.f32 2.0, %v1565_v29  ;;  %2027 = vmatprep.mubr.f32.mxu1 %v1568_v38  ;;  %2158 = vmatprep.subr.bf16.mxu0 %v2157_v59 }
 0xeae   : > { %2160 = vmatpush3.bf16.msra.mxu0 %v2157_v59 }
 0xeaf   : > { %v1569_v48 = vsub.f32 %v3255_v56, %v1567_v41 }
 0xeb1   : > { %2028 = vmatmul.mubr.f32.vlgmr.msra.gmra.mrb[0].mxu1 %v1569_v48 }
 0xf84   : > { %v2029_v56 = vpop.f32.mrb[0].mxu1 }
 0xf85   : > { %v1658_v44 = vadd.f32 1e-07, %v2029_v56  ;;  %v1652_v60 = vpop.f32.mrb[1].mxu1 }
 0xf86   : > { %v1653_v62 = vadd.f32 1e-07, %v1652_v60 }
 0xf87   : > { %2284 = vrcp.f32 %v1658_v44 }
 0xf88   : > { %2286 = vrcp.f32 %v1653_v62 }
 0xf91   : > { %v2285_v45 = vpop.eup %2284 }
 0xf92   : > { %v2287_v63 = vpop.eup %2286  ;;  %v1664_v46 = vmul.f32 %v2285_v45, %v1569_v48 }
 0xf93   : > { %v1662_v3 = vmul.f32 %v2287_v63, %v1568_v38 }
 0xf95   : > { %2062 = vmatprep.mubr.f32.mxu0 %v1662_v3 }
 0xf96   : > { %2063 = vmatmul.mubr.f32.vlgmr.msra.gmra.mrb[2].mxu0 %v1664_v46 }
0x1069   : > { %v2064_v9 = vpop.f32.mrb[2].mxu0 }
0x106a   : > { %v1760_v10 = vadd.f32 %v2064_v9, %v1897_v7  ;;  %v1754_v49 = vpop.f32.mrb[3].mxu0 }
0x106b   : > { %v1755_v12 = vadd.f32 %v1897_v7, %v1754_v49 }
0x106c   : > { %1764 = vst [vmem:[%s287_s28 + $0x8] sm:$0xff] %v1760_v10 }
0x106d   : > { %1763 = vst [vmem:[%s287_s28] sm:$0xff] %v1755_v12 }
0x106e   : > { %2417 = shalt.err (!%p2414_p4)
}
0x106f   : > { %s2418_s12 = scalar_lea.hbm %s3283_s15, 256  ;;  %s2422_s28 = scalar_lea.hbm %s3332_s5, 512 }
0x1070   : > { %p2419_p9 = scmp.ne.s32.totalorder %s3283_s15, %s2418_s12  ;;  %p2423_p8 = scmp.lt.u32.totalorder %s3283_s15, %s3332_s5 }
0x1071   : > { %p2424_p13 = scmp.lt.u32.totalorder %s2422_s28, %s2418_s12  ;;  %p2426_p10 = scmp.lt.u32.totalorder %s2418_s12, %s3283_s15 }
0x1072   : > { %p2420_p0 = pnand %p2419_p9, %p2715_p5 }
0x1073   : > { %p2425_p6 = por %p2424_p13, %p2423_p8 }
0x1074   : > { %p2421_p11 = pneg %p2420_p0 }
0x1075   : > { %p2427_p3 = por %p2426_p10, %p2425_p6 }
0x1077   : > { %p2428_p7 = pnand %p2427_p3, %p2421_p11 }
0x1079   : > { %2431 = shalt.err (!%p2428_p7)
}
0x107a   : > { %s2529_s26 = smov 128   ;;  %s2530_s11 = smov 8  }
0x107b   : > { %2175 = dma.vmem_to_hbm [thread:$0]  (%p2715_p5), %s3278_s17, 256, %s3283_s15, %s1766_s16, %s2529_s26, %s2529_s26, %s2530_s11  }
0x107c PF: > { %s1794_s13 = sand.u32 1, %s2466_s18   ;;  %p3350_p12 = scmp.ne.s32.totalorder %s3337_s25, 0 }
0x107d   : > { %p3351_p1 = scmp.ge.s32.totalorder %s2478_s21, 2  ;;  %s1795_s9 = scalar_lea.sflag [#allocation5], %s1794_s13 }
0x107f   : > { %p2192_p2 = pnand %p3351_p1, %p3350_p12 }
0x1081   : > { %2461 = dma.done.wait (!%p2192_p2), %s1795_s9, 256  }
0x1082   : > { %2463 = vsyncadd (!%p2192_p2), %s1795_s9, 4294967040  ;;  %p20_p4 = scmp.ge.s32.totalorder %s2701_s14, 4   ;;  %s3352_s18 = smov %s2470_s19 }
0x1083   : > { %s3353_s19 = smov %s2474_s20  ;;  %s3354_s20 = smov %s2711_s30 }
0x1084   : > { %s3355_s21 = smov %s2701_s14  ;;  %22 = sbr.rel (!%p20_p4) target bundleno = 7 (0x7), region = 97 }
0x108b   :  { %1800 = vsyncpa [#allocation4], 1 }
0x108c   :  { %1802 = vsyncpa [#allocation4 + $0x1], 1 }
0x108d   :  { %1803 = vsyncpa [#allocation7], 1 }
0x108e   :  { %1804 = vsyncpa [#allocation10], 1 }
0x108f   :  { %1805 = vsyncpa [#allocation5], 1 }
0x1090   :  { %1807 = vsyncpa [#allocation5 + $0x1], 1 }

</bundles_post_ra>
